<compile_context>
chip_gen: v5e
topology: v5e:2x2
jax: 0.10.0
libtpu: 0.0.40
codegen_flags: <defaults>
</compile_context>

<pallas_src>
import math

import jax
import jax.numpy as jnp
from jax import lax
from jax.experimental import pallas as pl
from jax.experimental.pallas import tpu as pltpu

# ---- synthetic "small BERT" config (encoder.config.hidden_size == H) ----
B, S, H = 2, 8, 32          # batch, seq, hidden
NH, DH = 2, 16              # heads, head_dim
HD = NH * DH                # 32 (== H)
F = 64                      # FFN intermediate
L = 2                       # encoder layers
VOCAB = 50
NCLS = 2
LANES = 128                 # lane-dense padded width
EPS = 1e-12
NEG_INF = -1e9

# ---- packed weight slab (bf16, (W_ROWS, 128)) ----
# per-layer block of W_LAYER_ROWS rows:
#   +0   : fused QKV weight (H rows; lanes 0:32 = Q*1/sqrt(DH), 32:64 = K, 64:96 = V)
#   +32  : attention output projection (HD rows, H lanes)
#   +64  : FFN in  (H rows, F lanes)
#   +96  : FFN out (F rows, H lanes)
# final 32-row block: classifier weight padded to 128 lanes.
W_LAYER_ROWS = H + HD + H + F        # 160
W_QKV, W_WO, W_W1, W_W2 = 0, H, H + HD, H + HD + H
W_CLS = L * W_LAYER_ROWS             # 320
W_ROWS = W_CLS + H                   # 352

# ---- packed vector slab (f32, (V_ROWS, 128)): one row per small vector ----
#   row 0/1: embedding-LN gamma/beta
#   per layer l (base 2 + 8*l): +0 QKV bias, +1 attn-out bias, +2/+3 LN1 g/b,
#                               +4 FFN-in bias, +5 FFN-out bias, +6/+7 LN2 g/b
#   row 2 + 8*L: classifier bias (padded to 128 lanes)
V_ELN_G, V_ELN_B = 0, 1
V_LAYER = 8
V_BCLS = 2 + V_LAYER * L             # 18
V_ROWS = ((V_BCLS + 1 + 7) // 8) * 8  # 24


def _layer_norm(x, g, b):
    mu = jnp.mean(x, axis=-1, keepdims=True)
    var = jnp.mean(jnp.square(x - mu), axis=-1, keepdims=True)
    return (x - mu) * lax.rsqrt(var + EPS) * g + b


def _softmax_last(x):
    m = jnp.max(x, axis=-1, keepdims=True)
    e = jnp.exp(x - m)
    return e * pl.reciprocal(jnp.sum(e, axis=-1, keepdims=True), approx=True)


def rumour_cls_kernel(emb_ref, mask_ref, w_ref, vec_ref, out_ref):
    # emb_ref: (B, S, H) f32 ; mask_ref: (B, S) int32
    # w_ref:   (W_ROWS, 128) bf16 packed weight slab
    # vec_ref: (V_ROWS, 128) f32 packed bias / LayerNorm-parameter slab
    vec = vec_ref[...]

    # attention bias from the padding mask, computed once: (B, 1, S)
    bias = ((1.0 - mask_ref[...].astype(jnp.float32)) * NEG_INF).reshape(B, 1, S)

    x = emb_ref[...].reshape(B * S, H)
    x = _layer_norm(x, vec[V_ELN_G:V_ELN_G + 1, :H], vec[V_ELN_B:V_ELN_B + 1, :H])

    for l in range(L):                       # static unroll over layers
        wb = l * W_LAYER_ROWS
        vb = 2 + l * V_LAYER

        # ---- fused QKV projection: one lane-dense (H, 128) matmul ----
        # (1/sqrt(DH) already folded into Q weight & bias at prepare time)
        qkv = (jnp.dot(x.astype(jnp.bfloat16),
                       w_ref[wb + W_QKV:wb + W_QKV + H, :],
                       preferred_element_type=jnp.float32)
               + vec[vb + 0:vb + 1, :]).astype(jnp.bfloat16)
        q = qkv[:, 0 * HD:1 * HD].reshape(B, S, HD)
        k = qkv[:, 1 * HD:2 * HD].reshape(B, S, HD)
        v = qkv[:, 2 * HD:3 * HD].reshape(B, S, HD)

        # ---- attention, batched over B; NH=2 static head unroll ----
        ctx_heads = []
        for h in range(NH):
            qh = q[:, :, h * DH:(h + 1) * DH]
            kh = k[:, :, h * DH:(h + 1) * DH]
            vh = v[:, :, h * DH:(h + 1) * DH]
            s = jnp.einsum('bqd,bkd->bqk', qh, kh,
                           preferred_element_type=jnp.float32) + bias
            p = _softmax_last(s).astype(jnp.bfloat16)
            ctx_heads.append(jnp.einsum('bqk,bkd->bqd', p, vh,
                                        preferred_element_type=jnp.float32))
        ctx = jnp.concatenate(ctx_heads, axis=-1).reshape(B * S, HD)

        # ---- head-output projection: head reduction done in the MXU ----
        attn = jnp.dot(ctx.astype(jnp.bfloat16),
                       w_ref[wb + W_WO:wb + W_WO + HD, :H],
                       preferred_element_type=jnp.float32) + vec[vb + 1:vb + 2, :H]
        x = _layer_norm(x + attn, vec[vb + 2:vb + 3, :H], vec[vb + 3:vb + 4, :H])

        # ---- FFN ----
        ff = jnp.dot(x.astype(jnp.bfloat16),
                     w_ref[wb + W_W1:wb + W_W1 + H, :F],
                     preferred_element_type=jnp.float32) + vec[vb + 4:vb + 5, :F]
        # TODO(synk): torch.nn.GELU default is exact erf; tanh approximation used here.
        ff = jax.nn.gelu(ff)
        ff = jnp.dot(ff.astype(jnp.bfloat16),
                     w_ref[wb + W_W2:wb + W_W2 + F, :H],
                     preferred_element_type=jnp.float32) + vec[vb + 5:vb + 6, :H]
        x = _layer_norm(x + ff, vec[vb + 6:vb + 7, :H], vec[vb + 7:vb + 8, :H])

    # ---- classifier on all B*S rows (same single MXU push; the wrapper keeps
    #      rows {0, S} = the [CLS] token of each sequence, cols 0:NCLS) ----
    out_ref[...] = jnp.dot(x.astype(jnp.bfloat16), w_ref[W_CLS:W_CLS + H, :],
                           preferred_element_type=jnp.float32) + vec[V_BCLS:V_BCLS + 1, :]


def init_params(key):
    ks = iter(jax.random.split(key, 9))

    def nrm(shape):
        return (0.02 * jax.random.normal(next(ks), shape)).astype(jnp.float32)

    return dict(
        tok_emb=nrm((VOCAB, H)),
        pos_emb=nrm((S, H)),
        eln_g=jnp.ones((H,), jnp.float32), eln_b=jnp.zeros((H,), jnp.float32),
        wq=nrm((L, H, HD)), bq=jnp.zeros((L, HD), jnp.float32),
        wk=nrm((L, H, HD)), bk=jnp.zeros((L, HD), jnp.float32),
        wv=nrm((L, H, HD)), bv=jnp.zeros((L, HD), jnp.float32),
        wo=nrm((L, HD, H)), bo=jnp.zeros((L, H), jnp.float32),
        ln1g=jnp.ones((L, H), jnp.float32), ln1b=jnp.zeros((L, H), jnp.float32),
        w1=nrm((L, H, F)), b1=jnp.zeros((L, F), jnp.float32),
        w2=nrm((L, F, H)), b2=jnp.zeros((L, H), jnp.float32),
        ln2g=jnp.ones((L, H), jnp.float32), ln2b=jnp.zeros((L, H), jnp.float32),
        wcls=nrm((H, NCLS)), bcls=jnp.zeros((NCLS,), jnp.float32),
    )


def prepare_params(p):
    """One-time packing: QKV fusion + 1/sqrt(DH) folding, zero-padding, bf16
    cast, and slab packing are all hoisted out of the per-call forward."""
    scale = 1.0 / math.sqrt(DH)
    w = jnp.zeros((W_ROWS, LANES), jnp.float32)
    vec = jnp.zeros((V_ROWS, LANES), jnp.float32)

    vec = vec.at[V_ELN_G, :H].set(p["eln_g"]).at[V_ELN_B, :H].set(p["eln_b"])
    for l in range(L):
        wb = l * W_LAYER_ROWS
        vb = 2 + l * V_LAYER
        w = w.at[wb + W_QKV:wb + W_QKV + H, 0 * HD:1 * HD].set(p["wq"][l] * scale)
        w = w.at[wb + W_QKV:wb + W_QKV + H, 1 * HD:2 * HD].set(p["wk"][l])
        w = w.at[wb + W_QKV:wb + W_QKV + H, 2 * HD:3 * HD].set(p["wv"][l])
        w = w.at[wb + W_WO:wb + W_WO + HD, :H].set(p["wo"][l])
        w = w.at[wb + W_W1:wb + W_W1 + H, :F].set(p["w1"][l])
        w = w.at[wb + W_W2:wb + W_W2 + F, :H].set(p["w2"][l])
        vec = vec.at[vb + 0, 0 * HD:1 * HD].set(p["bq"][l] * scale)
        vec = vec.at[vb + 0, 1 * HD:2 * HD].set(p["bk"][l])
        vec = vec.at[vb + 0, 2 * HD:3 * HD].set(p["bv"][l])
        vec = vec.at[vb + 1, :H].set(p["bo"][l])
        vec = vec.at[vb + 2, :H].set(p["ln1g"][l])
        vec = vec.at[vb + 3, :H].set(p["ln1b"][l])
        vec = vec.at[vb + 4, :F].set(p["b1"][l])
        vec = vec.at[vb + 5, :H].set(p["b2"][l])
        vec = vec.at[vb + 6, :H].set(p["ln2g"][l])
        vec = vec.at[vb + 7, :H].set(p["ln2b"][l])
    w = w.at[W_CLS:W_CLS + H, :NCLS].set(p["wcls"])
    vec = vec.at[V_BCLS, :NCLS].set(p["bcls"])

    return dict(tok_emb=p["tok_emb"], pos_emb=p["pos_emb"],
                w_slab=w.astype(jnp.bfloat16), vec_slab=vec)


@jax.jit
def rumour_cls_forward(prepped, reps, masks):
    # token-embedding gather + position embeddings stay in plain JAX.
    emb = prepped["tok_emb"][reps] + prepped["pos_emb"][None, :, :]      # (B, S, H)

    vmem = pl.BlockSpec(memory_space=pltpu.MemorySpace.VMEM)
    # Single no-grid invocation: 4 operands, everything VMEM-resident, no
    # pipelining / double-buffering overhead. (If B ever grows, add grid=(B,)
    # with dimension_semantics=("parallel",) for v7x's second TensorCore.)
    out = pl.pallas_call(
        rumour_cls_kernel,
        out_shape=jax.ShapeDtypeStruct((B * S, LANES), jnp.float32),
        in_specs=[vmem, vmem, vmem, vmem],
        out_specs=vmem,
    )(emb, masks.astype(jnp.int32), prepped["w_slab"], prepped["vec_slab"])
    # texts_emb[:, 0, :] -> logits: rows 0 and S of the stacked activation.
    return out[::S, :NCLS]


if __name__ == "__main__":
    key = jax.random.PRNGKey(0)
    pkey, rkey = jax.random.split(key)
    # TODO(synk): pretrained AutoModel weights cannot be loaded; deterministic random init instead.
    params = init_params(pkey)
    prepped = prepare_params(params)          # one-time packing / bf16 cast

    reps = jax.random.randint(rkey, (B, S), 0, VOCAB, dtype=jnp.int32)   # token ids
    masks = jnp.ones((B, S), jnp.int32).at[:, 6:].set(0)                 # last 2 tokens padded

    logits = rumour_cls_forward(prepped, reps, masks)
    jax.block_until_ready(logits)
    assert logits.shape == (B, NCLS) and logits.dtype == jnp.float32
    print("KERNEL_OK")
</pallas_src>

<mosaic_0001>
module attributes {stable_mosaic.version = 11 : i64} {
  func.func @rumour_cls_kernel(%arg0: memref<2x8x32xf32, #tpu.memory_space<vmem>>, %arg1: memref<2x8xi32, #tpu.memory_space<vmem>>, %arg2: memref<352x128xbf16, #tpu.memory_space<vmem>>, %arg3: memref<24x128xf32, #tpu.memory_space<vmem>>, %arg4: memref<16x128xf32, #tpu.memory_space<vmem>>) attributes {dimension_semantics = [], scalar_prefetch = 0 : i64, scratch_operands = 0 : i64, tpu.core_type = #tpu.core_type<tc>} {
    %c0 = arith.constant 0 : index
    %c0_0 = arith.constant 0 : index
    %0 = vector.load %arg3[%c0, %c0_0] : memref<24x128xf32, #tpu.memory_space<vmem>>, vector<24x128xf32>
    %c0_1 = arith.constant 0 : index
    %c0_2 = arith.constant 0 : index
    %1 = vector.load %arg1[%c0_1, %c0_2] : memref<2x8xi32, #tpu.memory_space<vmem>>, vector<2x8xi32>
    %2 = arith.sitofp %1 : vector<2x8xi32> to vector<2x8xf32>
    %cst = arith.constant 1.000000e+00 : f32
    %3 = vector.broadcast %cst : f32 to vector<2x8xf32>
    %4 = arith.subf %3, %2 : vector<2x8xf32>
    %cst_3 = arith.constant -1.000000e+09 : f32
    %5 = vector.broadcast %cst_3 : f32 to vector<2x8xf32>
    %6 = arith.mulf %4, %5 : vector<2x8xf32>
    %7 = vector.shape_cast %6 : vector<2x8xf32> to vector<2x1x8xf32>
    %c0_4 = arith.constant 0 : index
    %c0_5 = arith.constant 0 : index
    %c0_6 = arith.constant 0 : index
    %8 = vector.load %arg0[%c0_4, %c0_5, %c0_6] : memref<2x8x32xf32, #tpu.memory_space<vmem>>, vector<2x8x32xf32>
    %9 = vector.shape_cast %8 : vector<2x8x32xf32> to vector<16x32xf32>
    %10 = vector.extract_strided_slice %0 {offsets = [0, 0], sizes = [1, 32], strides = [1, 1]} : vector<24x128xf32> to vector<1x32xf32>
    %11 = vector.extract_strided_slice %0 {offsets = [1, 0], sizes = [1, 32], strides = [1, 1]} : vector<24x128xf32> to vector<1x32xf32>
    %cst_7 = arith.constant dense<0.000000e+00> : vector<16xf32>
    %12 = vector.multi_reduction <add>, %9, %cst_7 [1] : vector<16x32xf32> to vector<16xf32>
    %13 = vector.shape_cast %12 : vector<16xf32> to vector<16x1xf32>
    %cst_8 = arith.constant 3.200000e+01 : f32
    %14 = vector.broadcast %cst_8 : f32 to vector<16x1xf32>
    %15 = arith.divf %13, %14 : vector<16x1xf32>
    %16 = vector.broadcast %15 : vector<16x1xf32> to vector<16x32xf32>
    %17 = arith.subf %9, %16 : vector<16x32xf32>
    %18 = arith.mulf %17, %17 : vector<16x32xf32>
    %cst_9 = arith.constant dense<0.000000e+00> : vector<16xf32>
    %19 = vector.multi_reduction <add>, %18, %cst_9 [1] : vector<16x32xf32> to vector<16xf32>
    %20 = vector.shape_cast %19 : vector<16xf32> to vector<16x1xf32>
    %cst_10 = arith.constant 3.200000e+01 : f32
    %21 = vector.broadcast %cst_10 : f32 to vector<16x1xf32>
    %22 = arith.divf %20, %21 : vector<16x1xf32>
    %23 = vector.broadcast %15 : vector<16x1xf32> to vector<16x32xf32>
    %24 = arith.subf %9, %23 : vector<16x32xf32>
    %cst_11 = arith.constant 9.99999996E-13 : f32
    %25 = vector.broadcast %cst_11 : f32 to vector<16x1xf32>
    %26 = arith.addf %22, %25 : vector<16x1xf32>
    %27 = math.rsqrt %26 : vector<16x1xf32>
    %28 = vector.broadcast %27 : vector<16x1xf32> to vector<16x32xf32>
    %29 = arith.mulf %24, %28 : vector<16x32xf32>
    %30 = vector.broadcast %10 : vector<1x32xf32> to vector<16x32xf32>
    %31 = arith.mulf %29, %30 : vector<16x32xf32>
    %32 = vector.broadcast %11 : vector<1x32xf32> to vector<16x32xf32>
    %33 = arith.addf %31, %32 : vector<16x32xf32>
    %34 = arith.truncf %33 : vector<16x32xf32> to vector<16x32xbf16>
    %c0_12 = arith.constant 0 : index
    %c0_13 = arith.constant 0 : index
    %35 = vector.load %arg2[%c0_12, %c0_13] : memref<352x128xbf16, #tpu.memory_space<vmem>>, vector<32x128xbf16>
    %cst_14 = arith.constant dense<0.000000e+00> : vector<16x128xf32>
    %36 = tpu.matmul %34, %35, %cst_14 {dimension_numbers = #tpu.dot_dimension_numbers<[1], [0], [0], [1], [0, 0, 1, 1], [], []>} : vector<16x32xbf16>, vector<32x128xbf16>, vector<16x128xf32> -> vector<16x128xf32>
    %37 = vector.extract_strided_slice %0 {offsets = [2, 0], sizes = [1, 128], strides = [1, 1]} : vector<24x128xf32> to vector<1x128xf32>
    %38 = vector.broadcast %37 : vector<1x128xf32> to vector<16x128xf32>
    %39 = arith.addf %36, %38 : vector<16x128xf32>
    %40 = arith.truncf %39 : vector<16x128xf32> to vector<16x128xbf16>
    %41 = vector.extract_strided_slice %40 {offsets = [0, 0], sizes = [16, 32], strides = [1, 1]} : vector<16x128xbf16> to vector<16x32xbf16>
    %42 = vector.shape_cast %41 : vector<16x32xbf16> to vector<2x8x32xbf16>
    %43 = vector.extract_strided_slice %40 {offsets = [0, 32], sizes = [16, 32], strides = [1, 1]} : vector<16x128xbf16> to vector<16x32xbf16>
    %44 = vector.shape_cast %43 : vector<16x32xbf16> to vector<2x8x32xbf16>
    %45 = vector.extract_strided_slice %40 {offsets = [0, 64], sizes = [16, 32], strides = [1, 1]} : vector<16x128xbf16> to vector<16x32xbf16>
    %46 = vector.shape_cast %45 : vector<16x32xbf16> to vector<2x8x32xbf16>
    %47 = vector.extract_strided_slice %42 {offsets = [0, 0, 0], sizes = [2, 8, 16], strides = [1, 1, 1]} : vector<2x8x32xbf16> to vector<2x8x16xbf16>
    %48 = vector.extract_strided_slice %44 {offsets = [0, 0, 0], sizes = [2, 8, 16], strides = [1, 1, 1]} : vector<2x8x32xbf16> to vector<2x8x16xbf16>
    %49 = vector.extract_strided_slice %46 {offsets = [0, 0, 0], sizes = [2, 8, 16], strides = [1, 1, 1]} : vector<2x8x32xbf16> to vector<2x8x16xbf16>
    "tpu.trace_start"() <{level = 10 : i32, message = "bqd,bkd->bqk"}> : () -> ()
    %cst_15 = arith.constant dense<0.000000e+00> : vector<2x8x8xf32>
    %50 = tpu.matmul %47, %48, %cst_15 {dimension_numbers = #tpu.dot_dimension_numbers<[2], [2], [1], [1], [0, 0, 0, 1, 1, 1], [0], [0]>} : vector<2x8x16xbf16>, vector<2x8x16xbf16>, vector<2x8x8xf32> -> vector<2x8x8xf32>
    "tpu.trace_stop"() : () -> ()
    %51 = vector.broadcast %7 : vector<2x1x8xf32> to vector<2x8x8xf32>
    %52 = arith.addf %50, %51 : vector<2x8x8xf32>
    %cst_16 = arith.constant dense<0xFF800000> : vector<2x8xf32>
    %53 = vector.multi_reduction <maximumf>, %52, %cst_16 [2] : vector<2x8x8xf32> to vector<2x8xf32>
    %54 = vector.shape_cast %53 : vector<2x8xf32> to vector<2x8x1xf32>
    %55 = vector.broadcast %54 : vector<2x8x1xf32> to vector<2x8x8xf32>
    %56 = arith.subf %52, %55 : vector<2x8x8xf32>
    %57 = math.exp %56 : vector<2x8x8xf32>
    %cst_17 = arith.constant dense<0.000000e+00> : vector<2x8xf32>
    %58 = vector.multi_reduction <add>, %57, %cst_17 [2] : vector<2x8x8xf32> to vector<2x8xf32>
    %59 = vector.shape_cast %58 : vector<2x8xf32> to vector<2x8x1xf32>
    %60 = tpu.reciprocal %59 {approx = true} : vector<2x8x1xf32> -> vector<2x8x1xf32>
    %61 = vector.broadcast %60 : vector<2x8x1xf32> to vector<2x8x8xf32>
    %62 = arith.mulf %57, %61 : vector<2x8x8xf32>
    %63 = arith.truncf %62 : vector<2x8x8xf32> to vector<2x8x8xbf16>
    "tpu.trace_start"() <{level = 10 : i32, message = "bqk,bkd->bqd"}> : () -> ()
    %cst_18 = arith.constant dense<0.000000e+00> : vector<2x8x16xf32>
    %64 = tpu.matmul %63, %49, %cst_18 {dimension_numbers = #tpu.dot_dimension_numbers<[2], [1], [1], [2], [0, 0, 0, 1, 1, 2], [0], [0]>} : vector<2x8x8xbf16>, vector<2x8x16xbf16>, vector<2x8x16xf32> -> vector<2x8x16xf32>
    "tpu.trace_stop"() : () -> ()
    %65 = vector.extract_strided_slice %42 {offsets = [0, 0, 16], sizes = [2, 8, 16], strides = [1, 1, 1]} : vector<2x8x32xbf16> to vector<2x8x16xbf16>
    %66 = vector.extract_strided_slice %44 {offsets = [0, 0, 16], sizes = [2, 8, 16], strides = [1, 1, 1]} : vector<2x8x32xbf16> to vector<2x8x16xbf16>
    %67 = vector.extract_strided_slice %46 {offsets = [0, 0, 16], sizes = [2, 8, 16], strides = [1, 1, 1]} : vector<2x8x32xbf16> to vector<2x8x16xbf16>
    "tpu.trace_start"() <{level = 10 : i32, message = "bqd,bkd->bqk"}> : () -> ()
    %cst_19 = arith.constant dense<0.000000e+00> : vector<2x8x8xf32>
    %68 = tpu.matmul %65, %66, %cst_19 {dimension_numbers = #tpu.dot_dimension_numbers<[2], [2], [1], [1], [0, 0, 0, 1, 1, 1], [0], [0]>} : vector<2x8x16xbf16>, vector<2x8x16xbf16>, vector<2x8x8xf32> -> vector<2x8x8xf32>
    "tpu.trace_stop"() : () -> ()
    %69 = vector.broadcast %7 : vector<2x1x8xf32> to vector<2x8x8xf32>
    %70 = arith.addf %68, %69 : vector<2x8x8xf32>
    %cst_20 = arith.constant dense<0xFF800000> : vector<2x8xf32>
    %71 = vector.multi_reduction <maximumf>, %70, %cst_20 [2] : vector<2x8x8xf32> to vector<2x8xf32>
    %72 = vector.shape_cast %71 : vector<2x8xf32> to vector<2x8x1xf32>
    %73 = vector.broadcast %72 : vector<2x8x1xf32> to vector<2x8x8xf32>
    %74 = arith.subf %70, %73 : vector<2x8x8xf32>
    %75 = math.exp %74 : vector<2x8x8xf32>
    %cst_21 = arith.constant dense<0.000000e+00> : vector<2x8xf32>
    %76 = vector.multi_reduction <add>, %75, %cst_21 [2] : vector<2x8x8xf32> to vector<2x8xf32>
    %77 = vector.shape_cast %76 : vector<2x8xf32> to vector<2x8x1xf32>
    %78 = tpu.reciprocal %77 {approx = true} : vector<2x8x1xf32> -> vector<2x8x1xf32>
    %79 = vector.broadcast %78 : vector<2x8x1xf32> to vector<2x8x8xf32>
    %80 = arith.mulf %75, %79 : vector<2x8x8xf32>
    %81 = arith.truncf %80 : vector<2x8x8xf32> to vector<2x8x8xbf16>
    "tpu.trace_start"() <{level = 10 : i32, message = "bqk,bkd->bqd"}> : () -> ()
    %cst_22 = arith.constant dense<0.000000e+00> : vector<2x8x16xf32>
    %82 = tpu.matmul %81, %67, %cst_22 {dimension_numbers = #tpu.dot_dimension_numbers<[2], [1], [1], [2], [0, 0, 0, 1, 1, 2], [0], [0]>} : vector<2x8x8xbf16>, vector<2x8x16xbf16>, vector<2x8x16xf32> -> vector<2x8x16xf32>
    "tpu.trace_stop"() : () -> ()
    %83 = tpu.concatenate %64, %82 in 2 : vector<2x8x16xf32>, vector<2x8x16xf32> -> vector<2x8x32xf32>
    %84 = vector.shape_cast %83 : vector<2x8x32xf32> to vector<16x32xf32>
    %85 = arith.truncf %84 : vector<16x32xf32> to vector<16x32xbf16>
    %c32 = arith.constant 32 : index
    %c0_23 = arith.constant 0 : index
    %86 = vector.load %arg2[%c32, %c0_23] : memref<352x128xbf16, #tpu.memory_space<vmem>>, vector<32x32xbf16>
    %cst_24 = arith.constant dense<0.000000e+00> : vector<16x32xf32>
    %87 = tpu.matmul %85, %86, %cst_24 {dimension_numbers = #tpu.dot_dimension_numbers<[1], [0], [0], [1], [0, 0, 1, 1], [], []>} : vector<16x32xbf16>, vector<32x32xbf16>, vector<16x32xf32> -> vector<16x32xf32>
    %88 = vector.extract_strided_slice %0 {offsets = [3, 0], sizes = [1, 32], strides = [1, 1]} : vector<24x128xf32> to vector<1x32xf32>
    %89 = vector.broadcast %88 : vector<1x32xf32> to vector<16x32xf32>
    %90 = arith.addf %87, %89 : vector<16x32xf32>
    %91 = arith.addf %33, %90 : vector<16x32xf32>
    %92 = vector.extract_strided_slice %0 {offsets = [4, 0], sizes = [1, 32], strides = [1, 1]} : vector<24x128xf32> to vector<1x32xf32>
    %93 = vector.extract_strided_slice %0 {offsets = [5, 0], sizes = [1, 32], strides = [1, 1]} : vector<24x128xf32> to vector<1x32xf32>
    %cst_25 = arith.constant dense<0.000000e+00> : vector<16xf32>
    %94 = vector.multi_reduction <add>, %91, %cst_25 [1] : vector<16x32xf32> to vector<16xf32>
    %95 = vector.shape_cast %94 : vector<16xf32> to vector<16x1xf32>
    %cst_26 = arith.constant 3.200000e+01 : f32
    %96 = vector.broadcast %cst_26 : f32 to vector<16x1xf32>
    %97 = arith.divf %95, %96 : vector<16x1xf32>
    %98 = vector.broadcast %97 : vector<16x1xf32> to vector<16x32xf32>
    %99 = arith.subf %91, %98 : vector<16x32xf32>
    %100 = arith.mulf %99, %99 : vector<16x32xf32>
    %cst_27 = arith.constant dense<0.000000e+00> : vector<16xf32>
    %101 = vector.multi_reduction <add>, %100, %cst_27 [1] : vector<16x32xf32> to vector<16xf32>
    %102 = vector.shape_cast %101 : vector<16xf32> to vector<16x1xf32>
    %cst_28 = arith.constant 3.200000e+01 : f32
    %103 = vector.broadcast %cst_28 : f32 to vector<16x1xf32>
    %104 = arith.divf %102, %103 : vector<16x1xf32>
    %105 = vector.broadcast %97 : vector<16x1xf32> to vector<16x32xf32>
    %106 = arith.subf %91, %105 : vector<16x32xf32>
    %cst_29 = arith.constant 9.99999996E-13 : f32
    %107 = vector.broadcast %cst_29 : f32 to vector<16x1xf32>
    %108 = arith.addf %104, %107 : vector<16x1xf32>
    %109 = math.rsqrt %108 : vector<16x1xf32>
    %110 = vector.broadcast %109 : vector<16x1xf32> to vector<16x32xf32>
    %111 = arith.mulf %106, %110 : vector<16x32xf32>
    %112 = vector.broadcast %92 : vector<1x32xf32> to vector<16x32xf32>
    %113 = arith.mulf %111, %112 : vector<16x32xf32>
    %114 = vector.broadcast %93 : vector<1x32xf32> to vector<16x32xf32>
    %115 = arith.addf %113, %114 : vector<16x32xf32>
    %116 = arith.truncf %115 : vector<16x32xf32> to vector<16x32xbf16>
    %c64 = arith.constant 64 : index
    %c0_30 = arith.constant 0 : index
    %117 = vector.load %arg2[%c64, %c0_30] : memref<352x128xbf16, #tpu.memory_space<vmem>>, vector<32x64xbf16>
    %cst_31 = arith.constant dense<0.000000e+00> : vector<16x64xf32>
    %118 = tpu.matmul %116, %117, %cst_31 {dimension_numbers = #tpu.dot_dimension_numbers<[1], [0], [0], [1], [0, 0, 1, 1], [], []>} : vector<16x32xbf16>, vector<32x64xbf16>, vector<16x64xf32> -> vector<16x64xf32>
    %119 = vector.extract_strided_slice %0 {offsets = [6, 0], sizes = [1, 64], strides = [1, 1]} : vector<24x128xf32> to vector<1x64xf32>
    %120 = vector.broadcast %119 : vector<1x64xf32> to vector<16x64xf32>
    %121 = arith.addf %118, %120 : vector<16x64xf32>
    %122 = arith.mulf %121, %121 : vector<16x64xf32>
    %123 = arith.mulf %121, %122 : vector<16x64xf32>
    %cst_32 = arith.constant 4.471500e-02 : f32
    %124 = vector.broadcast %cst_32 : f32 to vector<16x64xf32>
    %125 = arith.mulf %124, %123 : vector<16x64xf32>
    %126 = arith.addf %121, %125 : vector<16x64xf32>
    %cst_33 = arith.constant 0.797884583 : f32
    %127 = vector.broadcast %cst_33 : f32 to vector<16x64xf32>
    %128 = arith.mulf %127, %126 : vector<16x64xf32>
    %129 = math.tanh %128 : vector<16x64xf32>
    %cst_34 = arith.constant 1.000000e+00 : f32
    %130 = vector.broadcast %cst_34 : f32 to vector<16x64xf32>
    %131 = arith.addf %130, %129 : vector<16x64xf32>
    %cst_35 = arith.constant 5.000000e-01 : f32
    %132 = vector.broadcast %cst_35 : f32 to vector<16x64xf32>
    %133 = arith.mulf %132, %131 : vector<16x64xf32>
    %134 = arith.mulf %121, %133 : vector<16x64xf32>
    %135 = arith.truncf %134 : vector<16x64xf32> to vector<16x64xbf16>
    %c96 = arith.constant 96 : index
    %c0_36 = arith.constant 0 : index
    %136 = vector.load %arg2[%c96, %c0_36] : memref<352x128xbf16, #tpu.memory_space<vmem>>, vector<64x32xbf16>
    %cst_37 = arith.constant dense<0.000000e+00> : vector<16x32xf32>
    %137 = tpu.matmul %135, %136, %cst_37 {dimension_numbers = #tpu.dot_dimension_numbers<[1], [0], [0], [1], [0, 0, 1, 1], [], []>} : vector<16x64xbf16>, vector<64x32xbf16>, vector<16x32xf32> -> vector<16x32xf32>
    %138 = vector.extract_strided_slice %0 {offsets = [7, 0], sizes = [1, 32], strides = [1, 1]} : vector<24x128xf32> to vector<1x32xf32>
    %139 = vector.broadcast %138 : vector<1x32xf32> to vector<16x32xf32>
    %140 = arith.addf %137, %139 : vector<16x32xf32>
    %141 = arith.addf %115, %140 : vector<16x32xf32>
    %142 = vector.extract_strided_slice %0 {offsets = [8, 0], sizes = [1, 32], strides = [1, 1]} : vector<24x128xf32> to vector<1x32xf32>
    %143 = vector.extract_strided_slice %0 {offsets = [9, 0], sizes = [1, 32], strides = [1, 1]} : vector<24x128xf32> to vector<1x32xf32>
    %cst_38 = arith.constant dense<0.000000e+00> : vector<16xf32>
    %144 = vector.multi_reduction <add>, %141, %cst_38 [1] : vector<16x32xf32> to vector<16xf32>
    %145 = vector.shape_cast %144 : vector<16xf32> to vector<16x1xf32>
    %cst_39 = arith.constant 3.200000e+01 : f32
    %146 = vector.broadcast %cst_39 : f32 to vector<16x1xf32>
    %147 = arith.divf %145, %146 : vector<16x1xf32>
    %148 = vector.broadcast %147 : vector<16x1xf32> to vector<16x32xf32>
    %149 = arith.subf %141, %148 : vector<16x32xf32>
    %150 = arith.mulf %149, %149 : vector<16x32xf32>
    %cst_40 = arith.constant dense<0.000000e+00> : vector<16xf32>
    %151 = vector.multi_reduction <add>, %150, %cst_40 [1] : vector<16x32xf32> to vector<16xf32>
    %152 = vector.shape_cast %151 : vector<16xf32> to vector<16x1xf32>
    %cst_41 = arith.constant 3.200000e+01 : f32
    %153 = vector.broadcast %cst_41 : f32 to vector<16x1xf32>
    %154 = arith.divf %152, %153 : vector<16x1xf32>
    %155 = vector.broadcast %147 : vector<16x1xf32> to vector<16x32xf32>
    %156 = arith.subf %141, %155 : vector<16x32xf32>
    %cst_42 = arith.constant 9.99999996E-13 : f32
    %157 = vector.broadcast %cst_42 : f32 to vector<16x1xf32>
    %158 = arith.addf %154, %157 : vector<16x1xf32>
    %159 = math.rsqrt %158 : vector<16x1xf32>
    %160 = vector.broadcast %159 : vector<16x1xf32> to vector<16x32xf32>
    %161 = arith.mulf %156, %160 : vector<16x32xf32>
    %162 = vector.broadcast %142 : vector<1x32xf32> to vector<16x32xf32>
    %163 = arith.mulf %161, %162 : vector<16x32xf32>
    %164 = vector.broadcast %143 : vector<1x32xf32> to vector<16x32xf32>
    %165 = arith.addf %163, %164 : vector<16x32xf32>
    %166 = arith.truncf %165 : vector<16x32xf32> to vector<16x32xbf16>
    %c160 = arith.constant 160 : index
    %c0_43 = arith.constant 0 : index
    %167 = vector.load %arg2[%c160, %c0_43] : memref<352x128xbf16, #tpu.memory_space<vmem>>, vector<32x128xbf16>
    %cst_44 = arith.constant dense<0.000000e+00> : vector<16x128xf32>
    %168 = tpu.matmul %166, %167, %cst_44 {dimension_numbers = #tpu.dot_dimension_numbers<[1], [0], [0], [1], [0, 0, 1, 1], [], []>} : vector<16x32xbf16>, vector<32x128xbf16>, vector<16x128xf32> -> vector<16x128xf32>
    %169 = vector.extract_strided_slice %0 {offsets = [10, 0], sizes = [1, 128], strides = [1, 1]} : vector<24x128xf32> to vector<1x128xf32>
    %170 = vector.broadcast %169 : vector<1x128xf32> to vector<16x128xf32>
    %171 = arith.addf %168, %170 : vector<16x128xf32>
    %172 = arith.truncf %171 : vector<16x128xf32> to vector<16x128xbf16>
    %173 = vector.extract_strided_slice %172 {offsets = [0, 0], sizes = [16, 32], strides = [1, 1]} : vector<16x128xbf16> to vector<16x32xbf16>
    %174 = vector.shape_cast %173 : vector<16x32xbf16> to vector<2x8x32xbf16>
    %175 = vector.extract_strided_slice %172 {offsets = [0, 32], sizes = [16, 32], strides = [1, 1]} : vector<16x128xbf16> to vector<16x32xbf16>
    %176 = vector.shape_cast %175 : vector<16x32xbf16> to vector<2x8x32xbf16>
    %177 = vector.extract_strided_slice %172 {offsets = [0, 64], sizes = [16, 32], strides = [1, 1]} : vector<16x128xbf16> to vector<16x32xbf16>
    %178 = vector.shape_cast %177 : vector<16x32xbf16> to vector<2x8x32xbf16>
    %179 = vector.extract_strided_slice %174 {offsets = [0, 0, 0], sizes = [2, 8, 16], strides = [1, 1, 1]} : vector<2x8x32xbf16> to vector<2x8x16xbf16>
    %180 = vector.extract_strided_slice %176 {offsets = [0, 0, 0], sizes = [2, 8, 16], strides = [1, 1, 1]} : vector<2x8x32xbf16> to vector<2x8x16xbf16>
    %181 = vector.extract_strided_slice %178 {offsets = [0, 0, 0], sizes = [2, 8, 16], strides = [1, 1, 1]} : vector<2x8x32xbf16> to vector<2x8x16xbf16>
    "tpu.trace_start"() <{level = 10 : i32, message = "bqd,bkd->bqk"}> : () -> ()
    %cst_45 = arith.constant dense<0.000000e+00> : vector<2x8x8xf32>
    %182 = tpu.matmul %179, %180, %cst_45 {dimension_numbers = #tpu.dot_dimension_numbers<[2], [2], [1], [1], [0, 0, 0, 1, 1, 1], [0], [0]>} : vector<2x8x16xbf16>, vector<2x8x16xbf16>, vector<2x8x8xf32> -> vector<2x8x8xf32>
    "tpu.trace_stop"() : () -> ()
    %183 = vector.broadcast %7 : vector<2x1x8xf32> to vector<2x8x8xf32>
    %184 = arith.addf %182, %183 : vector<2x8x8xf32>
    %cst_46 = arith.constant dense<0xFF800000> : vector<2x8xf32>
    %185 = vector.multi_reduction <maximumf>, %184, %cst_46 [2] : vector<2x8x8xf32> to vector<2x8xf32>
    %186 = vector.shape_cast %185 : vector<2x8xf32> to vector<2x8x1xf32>
    %187 = vector.broadcast %186 : vector<2x8x1xf32> to vector<2x8x8xf32>
    %188 = arith.subf %184, %187 : vector<2x8x8xf32>
    %189 = math.exp %188 : vector<2x8x8xf32>
    %cst_47 = arith.constant dense<0.000000e+00> : vector<2x8xf32>
    %190 = vector.multi_reduction <add>, %189, %cst_47 [2] : vector<2x8x8xf32> to vector<2x8xf32>
    %191 = vector.shape_cast %190 : vector<2x8xf32> to vector<2x8x1xf32>
    %192 = tpu.reciprocal %191 {approx = true} : vector<2x8x1xf32> -> vector<2x8x1xf32>
    %193 = vector.broadcast %192 : vector<2x8x1xf32> to vector<2x8x8xf32>
    %194 = arith.mulf %189, %193 : vector<2x8x8xf32>
    %195 = arith.truncf %194 : vector<2x8x8xf32> to vector<2x8x8xbf16>
    "tpu.trace_start"() <{level = 10 : i32, message = "bqk,bkd->bqd"}> : () -> ()
    %cst_48 = arith.constant dense<0.000000e+00> : vector<2x8x16xf32>
    %196 = tpu.matmul %195, %181, %cst_48 {dimension_numbers = #tpu.dot_dimension_numbers<[2], [1], [1], [2], [0, 0, 0, 1, 1, 2], [0], [0]>} : vector<2x8x8xbf16>, vector<2x8x16xbf16>, vector<2x8x16xf32> -> vector<2x8x16xf32>
    "tpu.trace_stop"() : () -> ()
    %197 = vector.extract_strided_slice %174 {offsets = [0, 0, 16], sizes = [2, 8, 16], strides = [1, 1, 1]} : vector<2x8x32xbf16> to vector<2x8x16xbf16>
    %198 = vector.extract_strided_slice %176 {offsets = [0, 0, 16], sizes = [2, 8, 16], strides = [1, 1, 1]} : vector<2x8x32xbf16> to vector<2x8x16xbf16>
    %199 = vector.extract_strided_slice %178 {offsets = [0, 0, 16], sizes = [2, 8, 16], strides = [1, 1, 1]} : vector<2x8x32xbf16> to vector<2x8x16xbf16>
    "tpu.trace_start"() <{level = 10 : i32, message = "bqd,bkd->bqk"}> : () -> ()
    %cst_49 = arith.constant dense<0.000000e+00> : vector<2x8x8xf32>
    %200 = tpu.matmul %197, %198, %cst_49 {dimension_numbers = #tpu.dot_dimension_numbers<[2], [2], [1], [1], [0, 0, 0, 1, 1, 1], [0], [0]>} : vector<2x8x16xbf16>, vector<2x8x16xbf16>, vector<2x8x8xf32> -> vector<2x8x8xf32>
    "tpu.trace_stop"() : () -> ()
    %201 = vector.broadcast %7 : vector<2x1x8xf32> to vector<2x8x8xf32>
    %202 = arith.addf %200, %201 : vector<2x8x8xf32>
    %cst_50 = arith.constant dense<0xFF800000> : vector<2x8xf32>
    %203 = vector.multi_reduction <maximumf>, %202, %cst_50 [2] : vector<2x8x8xf32> to vector<2x8xf32>
    %204 = vector.shape_cast %203 : vector<2x8xf32> to vector<2x8x1xf32>
    %205 = vector.broadcast %204 : vector<2x8x1xf32> to vector<2x8x8xf32>
    %206 = arith.subf %202, %205 : vector<2x8x8xf32>
    %207 = math.exp %206 : vector<2x8x8xf32>
    %cst_51 = arith.constant dense<0.000000e+00> : vector<2x8xf32>
    %208 = vector.multi_reduction <add>, %207, %cst_51 [2] : vector<2x8x8xf32> to vector<2x8xf32>
    %209 = vector.shape_cast %208 : vector<2x8xf32> to vector<2x8x1xf32>
    %210 = tpu.reciprocal %209 {approx = true} : vector<2x8x1xf32> -> vector<2x8x1xf32>
    %211 = vector.broadcast %210 : vector<2x8x1xf32> to vector<2x8x8xf32>
    %212 = arith.mulf %207, %211 : vector<2x8x8xf32>
    %213 = arith.truncf %212 : vector<2x8x8xf32> to vector<2x8x8xbf16>
    "tpu.trace_start"() <{level = 10 : i32, message = "bqk,bkd->bqd"}> : () -> ()
    %cst_52 = arith.constant dense<0.000000e+00> : vector<2x8x16xf32>
    %214 = tpu.matmul %213, %199, %cst_52 {dimension_numbers = #tpu.dot_dimension_numbers<[2], [1], [1], [2], [0, 0, 0, 1, 1, 2], [0], [0]>} : vector<2x8x8xbf16>, vector<2x8x16xbf16>, vector<2x8x16xf32> -> vector<2x8x16xf32>
    "tpu.trace_stop"() : () -> ()
    %215 = tpu.concatenate %196, %214 in 2 : vector<2x8x16xf32>, vector<2x8x16xf32> -> vector<2x8x32xf32>
    %216 = vector.shape_cast %215 : vector<2x8x32xf32> to vector<16x32xf32>
    %217 = arith.truncf %216 : vector<16x32xf32> to vector<16x32xbf16>
    %c192 = arith.constant 192 : index
    %c0_53 = arith.constant 0 : index
    %218 = vector.load %arg2[%c192, %c0_53] : memref<352x128xbf16, #tpu.memory_space<vmem>>, vector<32x32xbf16>
    %cst_54 = arith.constant dense<0.000000e+00> : vector<16x32xf32>
    %219 = tpu.matmul %217, %218, %cst_54 {dimension_numbers = #tpu.dot_dimension_numbers<[1], [0], [0], [1], [0, 0, 1, 1], [], []>} : vector<16x32xbf16>, vector<32x32xbf16>, vector<16x32xf32> -> vector<16x32xf32>
    %220 = vector.extract_strided_slice %0 {offsets = [11, 0], sizes = [1, 32], strides = [1, 1]} : vector<24x128xf32> to vector<1x32xf32>
    %221 = vector.broadcast %220 : vector<1x32xf32> to vector<16x32xf32>
    %222 = arith.addf %219, %221 : vector<16x32xf32>
    %223 = arith.addf %165, %222 : vector<16x32xf32>
    %224 = vector.extract_strided_slice %0 {offsets = [12, 0], sizes = [1, 32], strides = [1, 1]} : vector<24x128xf32> to vector<1x32xf32>
    %225 = vector.extract_strided_slice %0 {offsets = [13, 0], sizes = [1, 32], strides = [1, 1]} : vector<24x128xf32> to vector<1x32xf32>
    %cst_55 = arith.constant dense<0.000000e+00> : vector<16xf32>
    %226 = vector.multi_reduction <add>, %223, %cst_55 [1] : vector<16x32xf32> to vector<16xf32>
    %227 = vector.shape_cast %226 : vector<16xf32> to vector<16x1xf32>
    %cst_56 = arith.constant 3.200000e+01 : f32
    %228 = vector.broadcast %cst_56 : f32 to vector<16x1xf32>
    %229 = arith.divf %227, %228 : vector<16x1xf32>
    %230 = vector.broadcast %229 : vector<16x1xf32> to vector<16x32xf32>
    %231 = arith.subf %223, %230 : vector<16x32xf32>
    %232 = arith.mulf %231, %231 : vector<16x32xf32>
    %cst_57 = arith.constant dense<0.000000e+00> : vector<16xf32>
    %233 = vector.multi_reduction <add>, %232, %cst_57 [1] : vector<16x32xf32> to vector<16xf32>
    %234 = vector.shape_cast %233 : vector<16xf32> to vector<16x1xf32>
    %cst_58 = arith.constant 3.200000e+01 : f32
    %235 = vector.broadcast %cst_58 : f32 to vector<16x1xf32>
    %236 = arith.divf %234, %235 : vector<16x1xf32>
    %237 = vector.broadcast %229 : vector<16x1xf32> to vector<16x32xf32>
    %238 = arith.subf %223, %237 : vector<16x32xf32>
    %cst_59 = arith.constant 9.99999996E-13 : f32
    %239 = vector.broadcast %cst_59 : f32 to vector<16x1xf32>
    %240 = arith.addf %236, %239 : vector<16x1xf32>
    %241 = math.rsqrt %240 : vector<16x1xf32>
    %242 = vector.broadcast %241 : vector<16x1xf32> to vector<16x32xf32>
    %243 = arith.mulf %238, %242 : vector<16x32xf32>
    %244 = vector.broadcast %224 : vector<1x32xf32> to vector<16x32xf32>
    %245 = arith.mulf %243, %244 : vector<16x32xf32>
    %246 = vector.broadcast %225 : vector<1x32xf32> to vector<16x32xf32>
    %247 = arith.addf %245, %246 : vector<16x32xf32>
    %248 = arith.truncf %247 : vector<16x32xf32> to vector<16x32xbf16>
    %c224 = arith.constant 224 : index
    %c0_60 = arith.constant 0 : index
    %249 = vector.load %arg2[%c224, %c0_60] : memref<352x128xbf16, #tpu.memory_space<vmem>>, vector<32x64xbf16>
    %cst_61 = arith.constant dense<0.000000e+00> : vector<16x64xf32>
    %250 = tpu.matmul %248, %249, %cst_61 {dimension_numbers = #tpu.dot_dimension_numbers<[1], [0], [0], [1], [0, 0, 1, 1], [], []>} : vector<16x32xbf16>, vector<32x64xbf16>, vector<16x64xf32> -> vector<16x64xf32>
    %251 = vector.extract_strided_slice %0 {offsets = [14, 0], sizes = [1, 64], strides = [1, 1]} : vector<24x128xf32> to vector<1x64xf32>
    %252 = vector.broadcast %251 : vector<1x64xf32> to vector<16x64xf32>
    %253 = arith.addf %250, %252 : vector<16x64xf32>
    %254 = arith.mulf %253, %253 : vector<16x64xf32>
    %255 = arith.mulf %253, %254 : vector<16x64xf32>
    %cst_62 = arith.constant 4.471500e-02 : f32
    %256 = vector.broadcast %cst_62 : f32 to vector<16x64xf32>
    %257 = arith.mulf %256, %255 : vector<16x64xf32>
    %258 = arith.addf %253, %257 : vector<16x64xf32>
    %cst_63 = arith.constant 0.797884583 : f32
    %259 = vector.broadcast %cst_63 : f32 to vector<16x64xf32>
    %260 = arith.mulf %259, %258 : vector<16x64xf32>
    %261 = math.tanh %260 : vector<16x64xf32>
    %cst_64 = arith.constant 1.000000e+00 : f32
    %262 = vector.broadcast %cst_64 : f32 to vector<16x64xf32>
    %263 = arith.addf %262, %261 : vector<16x64xf32>
    %cst_65 = arith.constant 5.000000e-01 : f32
    %264 = vector.broadcast %cst_65 : f32 to vector<16x64xf32>
    %265 = arith.mulf %264, %263 : vector<16x64xf32>
    %266 = arith.mulf %253, %265 : vector<16x64xf32>
    %267 = arith.truncf %266 : vector<16x64xf32> to vector<16x64xbf16>
    %c256 = arith.constant 256 : index
    %c0_66 = arith.constant 0 : index
    %268 = vector.load %arg2[%c256, %c0_66] : memref<352x128xbf16, #tpu.memory_space<vmem>>, vector<64x32xbf16>
    %cst_67 = arith.constant dense<0.000000e+00> : vector<16x32xf32>
    %269 = tpu.matmul %267, %268, %cst_67 {dimension_numbers = #tpu.dot_dimension_numbers<[1], [0], [0], [1], [0, 0, 1, 1], [], []>} : vector<16x64xbf16>, vector<64x32xbf16>, vector<16x32xf32> -> vector<16x32xf32>
    %270 = vector.extract_strided_slice %0 {offsets = [15, 0], sizes = [1, 32], strides = [1, 1]} : vector<24x128xf32> to vector<1x32xf32>
    %271 = vector.broadcast %270 : vector<1x32xf32> to vector<16x32xf32>
    %272 = arith.addf %269, %271 : vector<16x32xf32>
    %273 = arith.addf %247, %272 : vector<16x32xf32>
    %274 = vector.extract_strided_slice %0 {offsets = [16, 0], sizes = [1, 32], strides = [1, 1]} : vector<24x128xf32> to vector<1x32xf32>
    %275 = vector.extract_strided_slice %0 {offsets = [17, 0], sizes = [1, 32], strides = [1, 1]} : vector<24x128xf32> to vector<1x32xf32>
    %cst_68 = arith.constant dense<0.000000e+00> : vector<16xf32>
    %276 = vector.multi_reduction <add>, %273, %cst_68 [1] : vector<16x32xf32> to vector<16xf32>
    %277 = vector.shape_cast %276 : vector<16xf32> to vector<16x1xf32>
    %cst_69 = arith.constant 3.200000e+01 : f32
    %278 = vector.broadcast %cst_69 : f32 to vector<16x1xf32>
    %279 = arith.divf %277, %278 : vector<16x1xf32>
    %280 = vector.broadcast %279 : vector<16x1xf32> to vector<16x32xf32>
    %281 = arith.subf %273, %280 : vector<16x32xf32>
    %282 = arith.mulf %281, %281 : vector<16x32xf32>
    %cst_70 = arith.constant dense<0.000000e+00> : vector<16xf32>
    %283 = vector.multi_reduction <add>, %282, %cst_70 [1] : vector<16x32xf32> to vector<16xf32>
    %284 = vector.shape_cast %283 : vector<16xf32> to vector<16x1xf32>
    %cst_71 = arith.constant 3.200000e+01 : f32
    %285 = vector.broadcast %cst_71 : f32 to vector<16x1xf32>
    %286 = arith.divf %284, %285 : vector<16x1xf32>
    %287 = vector.broadcast %279 : vector<16x1xf32> to vector<16x32xf32>
    %288 = arith.subf %273, %287 : vector<16x32xf32>
    %cst_72 = arith.constant 9.99999996E-13 : f32
    %289 = vector.broadcast %cst_72 : f32 to vector<16x1xf32>
    %290 = arith.addf %286, %289 : vector<16x1xf32>
    %291 = math.rsqrt %290 : vector<16x1xf32>
    %292 = vector.broadcast %291 : vector<16x1xf32> to vector<16x32xf32>
    %293 = arith.mulf %288, %292 : vector<16x32xf32>
    %294 = vector.broadcast %274 : vector<1x32xf32> to vector<16x32xf32>
    %295 = arith.mulf %293, %294 : vector<16x32xf32>
    %296 = vector.broadcast %275 : vector<1x32xf32> to vector<16x32xf32>
    %297 = arith.addf %295, %296 : vector<16x32xf32>
    %298 = arith.truncf %297 : vector<16x32xf32> to vector<16x32xbf16>
    %c320 = arith.constant 320 : index
    %c0_73 = arith.constant 0 : index
    %299 = vector.load %arg2[%c320, %c0_73] : memref<352x128xbf16, #tpu.memory_space<vmem>>, vector<32x128xbf16>
    %cst_74 = arith.constant dense<0.000000e+00> : vector<16x128xf32>
    %300 = tpu.matmul %298, %299, %cst_74 {dimension_numbers = #tpu.dot_dimension_numbers<[1], [0], [0], [1], [0, 0, 1, 1], [], []>} : vector<16x32xbf16>, vector<32x128xbf16>, vector<16x128xf32> -> vector<16x128xf32>
    %301 = vector.extract_strided_slice %0 {offsets = [18, 0], sizes = [1, 128], strides = [1, 1]} : vector<24x128xf32> to vector<1x128xf32>
    %302 = vector.broadcast %301 : vector<1x128xf32> to vector<16x128xf32>
    %303 = arith.addf %300, %302 : vector<16x128xf32>
    %c0_75 = arith.constant 0 : index
    %c0_76 = arith.constant 0 : index
    %304 = vector.load %arg4[%c0_75, %c0_76] : memref<16x128xf32, #tpu.memory_space<vmem>>, vector<16x128xf32>
    tpu.vector_store %arg4[%c0_75, %c0_76], %303 {strides = array<i32>} : memref<16x128xf32, #tpu.memory_space<vmem>>, vector<16x128xf32>,
    return
  }
}

</mosaic_0001>

<bundles_post_ra>
// kernel: rumour_cls_forward.1
= control target key start
LH: loop header
LB: loop body
LE: loop exit
PB: predicated region body
PF: predicated region fallthrough
CT: control target
= control target key end

     0   :  { %vm29_vm0 = vcmask 261120   ;;  %v1382_v4 = vmov 32.0   ;;  %s1383_s24 = smov 80   ;;  %s1384_s25 = smov 96   ;;  %vm133_vm8 = vcmask 130048   ;;  %vm177_vm9 = vcmask 64512   ;;  %s1705_s0 = inlined_call_operand.vmem [shape: f32[2,8,32], index: 0, kind: input, shape index: {}]   ;;  %s1706_s2 = inlined_call_operand.vmem [shape: bf16[352,128], index: 2, kind: input, shape index: {}]   ;;  %s1707_s3 = inlined_call_operand.vmem [shape: f32[24,128], index: 3, kind: input, shape index: {}]   ;;  %s1708_s1 = inlined_call_operand.vmem [shape: s32[2,8], index: 1, kind: input, shape index: {}]   ;;  %s1709_s4 = inlined_call_operand.vmem [shape: f32[16,128], index: 4, kind: output, shape index: {}]  }
   0x1   :  { %v27_v0 = vld [vmem:[%s1705_s0] sm:$0xff]  ;;  %v28_v2 = vld [vmem:[%s1705_s0 + $0x8] sm:$0xff]  ;;  %1320 = vrcp.f32 %v1382_v4  ;;  %s1385_s26 = smov 112   ;;  %s1387_s29 = smov 48   ;;  %vm207_vm10 = vcmask 1043456  }
   0x2   :  { %v30_v1 = vsel %vm29_vm0, %v27_v0, 0.0  ;;  %v33_v3 = vsel %vm29_vm0, %v28_v2, 0.0  ;;  %v1282_v21 = vld [vmem:[%s1706_s2 + $0x8] sm:$0xff]  ;;  %v1281_v23 = vld [vmem:[%s1706_s2] sm:$0xff]  ;;  %s1388_s6 = smov 16  }
   0x3   :  { %31 = vadd.xlane.f32.xlu0 %v30_v1  ;;  %114 = vmatpush.bf16.msra.mxu0 %v1282_v21  ;;  %v1439_v40 = vld [vmem:[%s1707_s3] sm:$0xff] }
   0x4   :  { %v81_v43 = vperm.slane %v1439_v40, 0  ;;  %v84_v48 = vperm.slane %v1439_v40, 1  ;;  %v92_v53 = vperm.slane %v1439_v40, 2 }
   0x7   :  { %v1321_v5 = vpop.eup %1320  ;;  %115 = vmatpush.bf16.msra.mxu0 %v1281_v23 }
   0x8   :  { %v37_v6 = vmul.f32 32.0, %v1321_v5  ;;  %vm41_vm1 = vweird.f32 %v1321_v5 }
   0xa   :  { %v38_v7 = vsub.f32 1.0, %v37_v6 }
   0xb   :  { %34 = vadd.xlane.f32.xlu0 %v33_v3 }
   0xc   :  { %v39_v8 = vmul.f32 %v1321_v5, %v38_v7 }
   0xe   :  { %v40_v9 = vadd.f32 %v1321_v5, %v39_v8 }
  0x10   :  { %v1422_v10 = vsel %vm41_vm1, %v1321_v5, %v40_v9 }
  0x76   :  { %v32_v11 = vpop.xlane.xlu0 %31 }
  0x77   :  { %v43_v12 = vmul.f32 %v1422_v10, %v32_v11  ;;  %v21_v11 = vld [vmem:[%s1708_s1] sm:$0x3]  ;;  %s1386_s1 = smov 64  }
  0x79   :  { %v45_v13 = vsub.f32 %v27_v0, %v43_v12  ;;  %v22_v12 = vcvt.s32.f32 %v21_v11 }
  0x7b   :  { %v47_v14 = vmul.f32 %v45_v13, %v45_v13 }
  0x7d   :  { %v49_v15 = vsel %vm29_vm0, %v47_v14, 0.0 }
  0x7e   :  { %50 = vadd.xlane.f32.xlu1 %v49_v15  ;;  %v35_v16 = vpop.xlane.xlu0 %34 }
  0x7f   :  { %v44_v17 = vmul.f32 %v1422_v10, %v35_v16 }
  0x81   :  { %v46_v18 = vsub.f32 %v28_v2, %v44_v17 }
  0x83   :  { %v48_v19 = vmul.f32 %v46_v18, %v46_v18 }
  0x85   :  { %v52_v20 = vsel %vm29_vm0, %v48_v19, 0.0 }
  0x86   :  { %53 = vadd.xlane.f32.xlu1 %v52_v20 }
  0xf1   :  { %v51_v22 = vpop.xlane.xlu1 %50 }
  0xf2   :  { %v55_v24 = vmul.f32 %v51_v22, %v1422_v10 }
  0xf4   :  { %v57_v25 = vadd.f32 1e-12, %v55_v24 }
  0xf6   :  { %1322 = vrsqrt.f32 %v57_v25  ;;  %vm65_vm3 = vweird.f32 %v57_v25 }
  0xf9   :  { %v54_v26 = vpop.xlane.xlu1 %53 }
  0xfa   :  { %v56_v27 = vmul.f32 %v54_v26, %v1422_v10 }
  0xfc   :  { %v1323_v28 = vpop.eup %1322  ;;  %v58_v29 = vadd.f32 1e-12, %v56_v27 }
  0xfd   :  { %v60_v30 = vmul.f32 %v1323_v28, %v57_v25  ;;  %vm66_vm2 = vweird.f32 %v1323_v28 }
  0xfe   :  { %1324 = vrsqrt.f32 %v58_v29  ;;  %vm67_vm4 = vmor %vm65_vm3, %vm66_vm2  ;;  %vm75_vm6 = vweird.f32 %v58_v29  ;;  %vm541_vm2 = vcmask 523264  }
  0xff   :  { %v61_v31 = vmul.f32 %v1323_v28, %v60_v30 }
 0x101   :  { %v62_v32 = vmul.f32 0.5, %v61_v31 }
 0x103   :  { %v63_v33 = vsub.f32 1.5, %v62_v32 }
 0x104   :  { %v1325_v34 = vpop.eup %1324 }
 0x105   :  { %v64_v35 = vmul.f32 %v1323_v28, %v63_v33  ;;  %v70_v36 = vmul.f32 %v1325_v34, %v58_v29  ;;  %vm76_vm5 = vweird.f32 %v1325_v34 }
 0x106   :  { %vm77_vm7 = vmor %vm75_vm6, %vm76_vm5 }
 0x107   :  { %v71_v37 = vmul.f32 %v1325_v34, %v70_v36  ;;  %v68_v38 = vsel %vm67_vm4, %v1323_v28, %v64_v35 }
 0x108   :  { %v79_v42 = vmul.f32 %v68_v38, %v45_v13  ;;  %v23_v13 = vsub.f32 1.0, %v22_v12 }
 0x109   :  { %v72_v39 = vmul.f32 0.5, %v71_v37 }
 0x10a   :  { %v82_v47 = vmul.f32 %v81_v43, %v79_v42  ;;  %v24_v14 = vmul.f32 -1e+09, %v23_v13 }
 0x10b   :  { %v73_v41 = vsub.f32 1.5, %v72_v39 }
 0x10c   :  { %v1443_v50 = vadd.f32 %v84_v48, %v82_v47  ;;  %v1478_v15 = vperm.slane %v24_v14, 0  ;;  %v26_v19 = vrot.slane %v24_v14, 1 }
 0x10d   :  { %v74_v44 = vmul.f32 %v1325_v34, %v73_v41 }
 0x10e   :  { %v1482_v21 = vperm.slane %v26_v19, 0 }
 0x10f   :  { %v78_v45 = vsel %vm77_vm7, %v1325_v34, %v74_v44 }
 0x110   :  { %v80_v46 = vmul.f32 %v78_v45, %v46_v18 }
 0x112   :  { %v83_v49 = vmul.f32 %v81_v43, %v80_v46 }
 0x114   :  { %v1445_v51 = vadd.f32 %v84_v48, %v83_v49 }
 0x116   :  { %v87_v52 = vpack.c.bf16 %v1445_v51, %v1443_v50 }
 0x118   :  { %1176 = vmatmul.msk.bf16.vlgmr.msra.gmra.mxu0 %vm29_vm0, %v87_v52 }
 0x195   :  { %v117_v54 = vpop.f32.mrf.mxu0 }
 0x196   :  { %v118_v55 = vadd.f32 %v117_v54, %v92_v53 }
 0x198   :  { %v122_v56 = vpack.c.bf16 %v118_v55, %v118_v55 }
 0x19a   :  { %v129_v57 = vunpack.c.l.b16 %v122_v56 }
 0x19c   :  { %v1451_v58 = vpack.c.b16 %v129_v57, %v129_v57 }
 0x19d   :  { %v119_v59 = vpop.f32.mrf.mxu0 }
 0x19e   :  { %v120_v60 = vadd.f32 %v119_v59, %v92_v53  ;;  %247 = vrot.lane.b32.xlu0 %v1451_v58, %s1383_s24  ;;  %131 = vrot.lane.b32.xlu2 %v1451_v58, %s1384_s25 }
 0x1a0   :  { %v123_v61 = vpack.c.bf16 %v120_v60, %v120_v60 }
 0x1a2   :  { %v154_v62 = vunpack.c.l.b16 %v123_v61 }
 0x1a4   :  { %v1457_v63 = vpack.c.b16 %v154_v62, %v154_v62 }
 0x1a6   :  { %270 = vrot.lane.b32.xlu1 %v1457_v63, %s1383_s24  ;;  %156 = vrot.lane.b32.xlu2 %v1457_v63, %s1384_s25 }
 0x1ae   :  { %245 = vrot.lane.b32.xlu2 %v1451_v58, %s1385_s26 }
 0x1b6   :  { %268 = vrot.lane.b32.xlu2 %v1457_v63, %s1385_s26 }
 0x1f8   :  { %v132_v0 = vpop.permute.xlu2 %131 }
 0x1f9   :  { %v138_v1 = vsel %vm133_vm8, %v132_v0, 0 }
 0x1fa   :  { %147 = vmatpush.bf16.xpose.msra.mxu1 %v138_v1 }
 0x200   :  { %v157_v2 = vpop.permute.xlu2 %156 }
 0x201   :  { %1177 = vmatmul.msk.bf16.vlgmr.msra.gmra.mxu1 %vm133_vm8, %v122_v56  ;;  %v162_v3 = vsel %vm133_vm8, %v157_v2, 0 }
 0x202   :  { %171 = vmatpush.bf16.xpose.msra.mxu2 %v162_v3 }
 0x208   :  { %v246_v6 = vpop.permute.xlu2 %245 }
 0x209   :  { %1178 = vmatmul.msk.bf16.vlgmr.msra.gmra.mxu2 %vm133_vm8, %v123_v61 }
 0x210   :  { %v248_v4 = vpop.permute.xlu0 %247  ;;  %v269_v9 = vpop.permute.xlu2 %268 }
 0x211   :  { %v253_v5 = vsel %vm133_vm8, %v248_v4, 0 }
 0x212   :  { %262 = vmatpush.bf16.xpose.msrb.mxu0 %v253_v5 }
 0x218   :  { %v271_v7 = vpop.permute.xlu1 %270 }
 0x219   :  { %1181 = vmatmul.msk.bf16.vlgmr.msrb.gmra.mxu0 %vm133_vm8, %v246_v6  ;;  %v276_v8 = vsel %vm133_vm8, %v271_v7, 0 }
 0x21a   :  { %285 = vmatpush.bf16.xpose.msrb.mxu1 %v276_v8 }
 0x221   :  { %1182 = vmatmul.msk.bf16.vlgmr.msrb.gmra.mxu1 %vm133_vm8, %v269_v9 }
 0x27e   :  { %v149_v16 = vpop.f32.mrf.mxu1 }
 0x27f   :  { %v150_v17 = vadd.f32 %v149_v16, %v1478_v15 }
 0x281   :  { %v178_v18 = vsel %vm177_vm9, %v150_v17, -inf }
 0x282   :  { %179 = vmax.xlane.f32.xlu2 %v178_v18 }
 0x286   :  { %v151_v20 = vpop.f32.mrf.mxu1 }
 0x28c   :  { %v173_v22 = vpop.f32.mrf.mxu2 }
 0x28d   :  { %v174_v23 = vadd.f32 %v173_v22, %v1482_v21  ;;  %v1284_v22 = vld [vmem:[%s1706_s2 + $0x18] sm:$0xff] }
 0x28e   :  { %394 = vmatpush.bf16.msra.mxu0 %v1284_v22 }
 0x28f   :  { %v181_v24 = vsel %vm177_vm9, %v174_v23, -inf }
 0x290   :  { %182 = vmax.xlane.f32.xlu0 %v181_v24 }
 0x294   :  { %v175_v25 = vpop.f32.mrf.mxu2 }
 0x296   :  { %v264_v26 = vpop.f32.mrf.mxu0 }
 0x297   :  { %v265_v27 = vadd.f32 %v264_v26, %v1478_v15 }
 0x299   :  { %v291_v28 = vsel %vm177_vm9, %v265_v27, -inf }
 0x29a   :  { %292 = vmax.xlane.f32.xlu1 %v291_v28 }
 0x29e   :  { %v266_v29 = vpop.f32.mrf.mxu0  ;;  %v287_v30 = vpop.f32.mrf.mxu1 }
 0x29f   :  { %v288_v31 = vadd.f32 %v287_v30, %v1482_v21  ;;  %v1283_v30 = vld [vmem:[%s1706_s2 + $0x10] sm:$0xff] }
 0x2a0   :  { %395 = vmatpush.bf16.msra.mxu0 %v1283_v30  ;;  %v459_v30 = vperm.slane %v1439_v40, 6 }
 0x2a1   :  { %v294_v32 = vsel %vm177_vm9, %v288_v31, -inf }
 0x2a2   :  { %295 = vmax.xlane.f32.xlu2 %v294_v32 }
 0x2a4   :  { %224 = vrot.lane.b32.xlu0 %v1457_v63, %s1386_s1 }
 0x2a6   :  { %v289_v33 = vpop.f32.mrf.mxu1 }
 0x2ba   :  { %202 = vrot.lane.b32.xlu2 %v1451_v58, %s1386_s1 }
 0x2c2   :  { %315 = vrot.lane.b32.xlu2 %v1451_v58, %s1387_s29 }
 0x2f5   :  { %v180_v34 = vpop.xlane.xlu2 %179 }
 0x2f6   :  { %v184_v35 = vsub.f32 %v150_v17, %v180_v34 }
 0x2f8   :  { %v186_v36 = vmul.f32 1.442695, %v184_v35 }
 0x2fa   :  { %1326 = vpow2.f32 %v186_v36 }
 0x300   :  { %v1327_v37 = vpop.eup %1326 }
 0x301   :  { %v190_v38 = vsel %vm177_vm9, %v1327_v37, 0.0 }
 0x302   :  { %191 = vadd.xlane.f32.xlu0 %v190_v38 }
 0x303   :  { %v183_v39 = vpop.xlane.xlu0 %182 }
 0x304   :  { %v185_v41 = vsub.f32 %v174_v23, %v183_v39 }
 0x306   :  { %v188_v42 = vmul.f32 1.442695, %v185_v41 }
 0x308   :  { %1328 = vpow2.f32 %v188_v42 }
 0x30d   :  { %v293_v43 = vpop.xlane.xlu1 %292 }
 0x30e   :  { %v1329_v44 = vpop.eup %1328  ;;  %v297_v45 = vsub.f32 %v265_v27, %v293_v43 }
 0x30f   :  { %v193_v46 = vsel %vm177_vm9, %v1329_v44, 0.0 }
 0x310   :  { %v299_v47 = vmul.f32 1.442695, %v297_v45  ;;  %194 = vadd.xlane.f32.xlu1 %v193_v46 }
 0x312   :  { %1330 = vpow2.f32 %v299_v47 }
 0x315   :  { %v296_v48 = vpop.xlane.xlu2 %295 }
 0x316   :  { %v298_v49 = vsub.f32 %v288_v31, %v296_v48  ;;  %336 = vrot.lane.b32.xlu0 %v1457_v63, %s1387_s29  ;;  %v225_v55 = vpop.permute.xlu0 %224 }
 0x317   :  { %v230_v58 = vsel %vm207_vm10, %v225_v55, 0 }
 0x318   :  { %v1331_v52 = vpop.eup %1330  ;;  %v301_v53 = vmul.f32 1.442695, %v298_v49 }
 0x319   :  { %v303_v54 = vsel %vm177_vm9, %v1331_v52, 0.0 }
 0x31a   :  { %1332 = vpow2.f32 %v301_v53  ;;  %304 = vadd.xlane.f32.xlu1 %v303_v54 }
 0x31d   :  { %v203_v56 = vpop.permute.xlu2 %202 }
 0x31e   :  { %v209_v57 = vsel %vm207_vm10, %v203_v56, 0 }
 0x31f   :  { %218 = vmatpush.bf16.msra.mxu3 %v209_v57 }
 0x320   :  { %v1333_v59 = vpop.eup %1332 }
 0x321   :  { %v306_v60 = vsel %vm177_vm9, %v1333_v59, 0.0 }
 0x322   :  { %307 = vadd.xlane.f32.xlu1 %v306_v60  ;;  %v1285_v60 = vld [vmem:[%s1706_s2 + $0x20] sm:$0xff] }
 0x323   :  { %239 = vmatpush.bf16.msrb.mxu3 %v230_v58 }
 0x325   :  { %v316_v61 = vpop.permute.xlu2 %315 }
 0x326   :  { %v321_v62 = vsel %vm207_vm10, %v316_v61, 0 }
 0x327   :  { %330 = vmatpush.bf16.msrb.mxu2 %v321_v62 }
 0x375   :  { %v192_v63 = vpop.xlane.xlu0 %191 }
 0x376   :  { %1334 = vrcp.f32 %v192_v63 }
 0x37c   :  { %v1335_v0 = vpop.eup %1334 }
 0x37d   :  { %v198_v1 = vmul.f32 %v1335_v0, %v1327_v37  ;;  %v372_v37 = vperm.slane %v1439_v40, 3 }
 0x37f   :  { %v200_v2 = vpack.c.bf16 %v198_v1, %v198_v1 }
 0x381   :  { %1179 = vmatmul.msk.bf16.vlgmr.msra.gmra.mxu3 %vm177_vm9, %v200_v2 }
 0x383   :  { %v195_v3 = vpop.xlane.xlu1 %194 }
 0x384   :  { %1336 = vrcp.f32 %v195_v3 }
 0x388   :  { %v337_v4 = vpop.permute.xlu0 %336 }
 0x389   :  { %v342_v5 = vsel %vm207_vm10, %v337_v4, 0 }
 0x38a   :  { %v1337_v6 = vpop.eup %1336  ;;  %351 = vmatpush.bf16.msra.mxu3 %v342_v5 }
 0x38b   :  { %v199_v7 = vmul.f32 %v1337_v6, %v1329_v44 }
 0x38d   :  { %v305_v8 = vpop.xlane.xlu1 %304  ;;  %v201_v9 = vpack.c.bf16 %v199_v7, %v199_v7 }
 0x38e   :  { %1338 = vrcp.f32 %v305_v8 }
 0x391   :  { %1180 = vmatmul.msk.bf16.vlgmr.msrb.gmra.mxu3 %vm177_vm9, %v201_v9 }
 0x394   :  { %v1339_v11 = vpop.eup %1338 }
 0x395   :  { %v311_v12 = vmul.f32 %v1339_v11, %v1331_v52  ;;  %v308_v13 = vpop.xlane.xlu1 %307 }
 0x396   :  { %1340 = vrcp.f32 %v308_v13 }
 0x397   :  { %v313_v14 = vpack.c.bf16 %v311_v12, %v311_v12 }
 0x399   :  { %1183 = vmatmul.msk.bf16.vlgmr.msrb.gmra.mxu2 %vm177_vm9, %v313_v14  ;;  %v448_v14 = vperm.slane %v1439_v40, 4 }
 0x39c   :  { %v1341_v16 = vpop.eup %1340 }
 0x39d   :  { %v312_v17 = vmul.f32 %v1341_v16, %v1333_v59 }
 0x39f   :  { %v314_v18 = vpack.c.bf16 %v312_v17, %v312_v17 }
 0x3a1   :  { %1184 = vmatmul.msk.bf16.vlgmr.msra.gmra.mxu3 %vm177_vm9, %v314_v18 }
 0x404   :  { %v220_v19 = vpop.f32.mrf.mxu3 }
 0x40c   :  { %v222_v20 = vpop.f32.mrf.mxu3 }
 0x414   :  { %v241_v23 = vpop.f32.mrf.mxu3 }
 0x41c   :  { %v243_v24 = vpop.f32.mrf.mxu3  ;;  %v332_v25 = vpop.f32.mrf.mxu2 }
 0x424   :  { %v334_v26 = vpop.f32.mrf.mxu2  ;;  %v353_v27 = vpop.f32.mrf.mxu3 }
 0x425   :  { %v1310_v28 = vpack.i.bf16 %v353_v27, %v332_v25  ;;  %v1290_v27 = vld [vmem:[%s1706_s2 + $0x48] sm:$0xff] }
 0x426   :  { %549 = vmatpush.bf16.msra.mxu2 %v1290_v27 }
 0x427   :  { %1311 = vrot.lane.b32.xlu1 %v1310_v28, %s1388_s6  ;;  %v1289_v28 = vld [vmem:[%s1706_s2 + $0x40] sm:$0xff] }
 0x42a   :  { %550 = vmatpush.bf16.msra.mxu2 %v1289_v28 }
 0x42c   :  { %v355_v29 = vpop.f32.mrf.mxu3 }
 0x42d   :  { %v1288_v29 = vld [vmem:[%s1706_s2 + $0x38] sm:$0xff] }
 0x42e   :  { %551 = vmatpush.bf16.msra.mxu2 %v1288_v29 }
 0x499   :  { %v1312_v31 = vpop.permute.xlu1 %1311 }
 0x49a   :  { %v1314_v32 = vunpack.i.h.bf16 %v1312_v31  ;;  %v1313_v33 = vunpack.i.l.bf16 %v1312_v31  ;;  %v1287_v31 = vld [vmem:[%s1706_s2 + $0x30] sm:$0xff] }
 0x49b   :  { %552 = vmatpush.bf16.msra.mxu2 %v1287_v31 }
 0x49c   :  { %v366_v34 = vsel %vm133_vm8, %v241_v23, %v1314_v32  ;;  %v365_v35 = vsel %vm133_vm8, %v220_v19, %v1313_v33  ;;  %v451_v19 = vperm.slane %v1439_v40, 5 }
 0x49d   :  { %v367_v36 = vpack.c.bf16 %v366_v34, %v365_v35 }
 0x49f   :  { %1193 = vmatmul.msk.bf16.vlgmr.msra.gmra.mxu0 %vm29_vm0, %v367_v36 }
 0x51c   :  { %v397_v38 = vpop.f32.mrf.mxu0 }
 0x51d   :  { %v398_v39 = vadd.f32 %v397_v38, %v372_v37 }
 0x51f   :  { %v402_v41 = vadd.f32 %v398_v39, %v1443_v50 }
 0x521   :  { %v404_v42 = vsel %vm29_vm0, %v402_v41, 0.0 }
 0x522   :  { %405 = vadd.xlane.f32.xlu2 %v404_v42 }
 0x524   :  { %v399_v43 = vpop.f32.mrf.mxu0 }
 0x525   :  { %v400_v44 = vadd.f32 %v399_v43, %v372_v37 }
 0x527   :  { %v403_v45 = vadd.f32 %v400_v44, %v1445_v51  ;;  %v1286_v51 = vld [vmem:[%s1706_s2 + $0x28] sm:$0xff] }
 0x528   :  { %481 = vmatpush.bf16.msra.mxu1 %v1286_v51 }
 0x529   :  { %v407_v46 = vsel %vm29_vm0, %v403_v45, 0.0 }
 0x52a   :  { %408 = vadd.xlane.f32.xlu0 %v407_v46 }
 0x52c   :  { %482 = vmatpush.bf16.msra.mxu1 %v1285_v60 }
 0x595   :  { %v406_v47 = vpop.xlane.xlu2 %405 }
 0x596   :  { %v410_v48 = vmul.f32 %v406_v47, %v1422_v10 }
 0x598   :  { %v412_v49 = vsub.f32 %v402_v41, %v410_v48 }
 0x59a   :  { %v414_v52 = vmul.f32 %v412_v49, %v412_v49 }
 0x59c   :  { %v416_v53 = vsel %vm29_vm0, %v414_v52, 0.0 }
 0x59d   :  { %v409_v54 = vpop.xlane.xlu0 %408  ;;  %417 = vadd.xlane.f32.xlu1 %v416_v53 }
 0x59e   :  { %v411_v50 = vmul.f32 %v409_v54, %v1422_v10 }
 0x5a0   :  { %v413_v55 = vsub.f32 %v403_v45, %v411_v50 }
 0x5a2   :  { %v415_v56 = vmul.f32 %v413_v55, %v413_v55 }
 0x5a4   :  { %v419_v57 = vsel %vm29_vm0, %v415_v56, 0.0 }
 0x5a5   :  { %420 = vadd.xlane.f32.xlu2 %v419_v57  ;;  %v516_v57 = vperm.slane %v1439_v40, 7 }
 0x610   :  { %v418_v58 = vpop.xlane.xlu1 %417 }
 0x611   :  { %v422_v59 = vmul.f32 %v418_v58, %v1422_v10 }
 0x613   :  { %v424_v61 = vadd.f32 1e-12, %v422_v59 }
 0x615   :  { %1342 = vrsqrt.f32 %v424_v61  ;;  %vm432_vm12 = vweird.f32 %v424_v61 }
 0x618   :  { %v421_v62 = vpop.xlane.xlu2 %420 }
 0x619   :  { %v423_v63 = vmul.f32 %v421_v62, %v1422_v10 }
 0x61b   :  { %v1343_v0 = vpop.eup %1342  ;;  %v425_v1 = vadd.f32 1e-12, %v423_v63 }
 0x61c   :  { %v427_v2 = vmul.f32 %v1343_v0, %v424_v61  ;;  %vm433_vm11 = vweird.f32 %v1343_v0 }
 0x61d   :  { %1344 = vrsqrt.f32 %v425_v1  ;;  %vm434_vm13 = vmor %vm432_vm12, %vm433_vm11  ;;  %vm442_vm15 = vweird.f32 %v425_v1 }
 0x61e   :  { %v428_v3 = vmul.f32 %v1343_v0, %v427_v2 }
 0x620   :  { %v429_v4 = vmul.f32 0.5, %v428_v3 }
 0x622   :  { %v430_v5 = vsub.f32 1.5, %v429_v4 }
 0x623   :  { %v1345_v6 = vpop.eup %1344 }
 0x624   :  { %v431_v7 = vmul.f32 %v1343_v0, %v430_v5  ;;  %v437_v8 = vmul.f32 %v1345_v6, %v425_v1  ;;  %vm443_vm14 = vweird.f32 %v1345_v6 }
 0x625   :  { %vm444_vm1 = vmor %vm442_vm15, %vm443_vm14 }
 0x626   :  { %v438_v9 = vmul.f32 %v1345_v6, %v437_v8  ;;  %v435_v11 = vsel %vm434_vm13, %v1343_v0, %v431_v7 }
 0x627   :  { %v446_v16 = vmul.f32 %v435_v11, %v412_v49  ;;  %v1292_v11 = vld [vmem:[%s1706_s2 + $0x58] sm:$0xff] }
 0x628   :  { %v439_v12 = vmul.f32 0.5, %v438_v9  ;;  %638 = vmatpush.bf16.msrb.mxu3 %v1292_v11 }
 0x629   :  { %v449_v20 = vmul.f32 %v448_v14, %v446_v16 }
 0x62a   :  { %v440_v13 = vsub.f32 1.5, %v439_v12 }
 0x62b   :  { %v452_v24 = vadd.f32 %v451_v19, %v449_v20 }
 0x62c   :  { %v441_v17 = vmul.f32 %v1345_v6, %v440_v13 }
 0x62e   :  { %v445_v18 = vsel %vm444_vm1, %v1345_v6, %v441_v17 }
 0x62f   :  { %v447_v22 = vmul.f32 %v445_v18, %v413_v55 }
 0x631   :  { %v450_v23 = vmul.f32 %v448_v14, %v447_v22  ;;  %v1291_v14 = vld [vmem:[%s1706_s2 + $0x50] sm:$0xff] }
 0x632   :  { %639 = vmatpush.bf16.msrb.mxu3 %v1291_v14 }
 0x633   :  { %v453_v25 = vadd.f32 %v451_v19, %v450_v23 }
 0x635   :  { %v454_v26 = vpack.c.bf16 %v453_v25, %v452_v24 }
 0x637   :  { %1202 = vmatmul.msk.bf16.vlgmr.msra.gmra.mxu1 %vm29_vm0, %v454_v26 }
 0x6b4   :  { %v484_v32 = vpop.f32.mrf.mxu1 }
 0x6b5   :  { %v485_v33 = vadd.f32 %v484_v32, %v459_v30 }
 0x6b7   :  { %v489_v34 = vmul.f32 %v485_v33, %v485_v33 }
 0x6b9   :  { %v491_v35 = vmul.f32 %v489_v34, %v485_v33 }
 0x6bb   :  { %v493_v36 = vmul.f32 0.044715, %v491_v35 }
 0x6bc   :  { %v486_v37 = vpop.f32.mrf.mxu1 }
 0x6bd   :  { %v495_v38 = vadd.f32 %v493_v36, %v485_v33  ;;  %v487_v39 = vadd.f32 %v486_v37, %v459_v30  ;;  %v1572_v30 = vld [vmem:[%s1707_s3 + $0x8] sm:$0xff] }
 0x6be   :  { %v605_v34 = vperm.slane %v1572_v30, 0 }
 0x6bf   :  { %v497_v41 = vmul.f32 0.7978846, %v495_v38  ;;  %v490_v42 = vmul.f32 %v487_v39, %v487_v39  ;;  %v608_v38 = vperm.slane %v1572_v30, 1 }
 0x6c1   :  { %v492_v43 = vmul.f32 %v490_v42, %v487_v39  ;;  %1346 = vtanh.f32 %v497_v41 }
 0x6c3   :  { %v494_v44 = vmul.f32 0.044715, %v492_v43 }
 0x6c5   :  { %v496_v45 = vadd.f32 %v494_v44, %v487_v39 }
 0x6c7   :  { %v498_v46 = vmul.f32 0.7978846, %v496_v45  ;;  %v1347_v47 = vpop.eup %1346 }
 0x6c8   :  { %v501_v48 = vadd.f32 1.0, %v1347_v47 }
 0x6c9   :  { %1348 = vtanh.f32 %v498_v46  ;;  %v616_v46 = vperm.slane %v1572_v30, 2 }
 0x6ca   :  { %v503_v52 = vmul.f32 0.5, %v501_v48 }
 0x6cc   :  { %v505_v50 = vmul.f32 %v503_v52, %v485_v33 }
 0x6cf   :  { %v1349_v49 = vpop.eup %1348 }
 0x6d0   :  { %v502_v53 = vadd.f32 1.0, %v1349_v49 }
 0x6d2   :  { %v504_v54 = vmul.f32 0.5, %v502_v53 }
 0x6d4   :  { %v506_v55 = vmul.f32 %v504_v54, %v487_v39 }
 0x6d6   :  { %v507_v56 = vpack.c.bf16 %v506_v55, %v505_v50 }
 0x6d8   :  { %1219 = vmatmul.msk.bf16.vlgmr.msra.gmra.mxu2 %vm541_vm2, %v507_v56 }
 0x75b   :  { %v554_v51 = vpop.f32.mrf.mxu2 }
 0x75c   :  { %v555_v58 = vadd.f32 %v554_v51, %v516_v57 }
 0x75e   :  { %v559_v59 = vadd.f32 %v555_v58, %v452_v24 }
 0x760   :  { %v561_v60 = vsel %vm29_vm0, %v559_v59, 0.0 }
 0x761   :  { %562 = vadd.xlane.f32.xlu0 %v561_v60 }
 0x763   :  { %v556_v61 = vpop.f32.mrf.mxu2 }
 0x764   :  { %v557_v62 = vadd.f32 %v556_v61, %v516_v57 }
 0x766   :  { %v560_v63 = vadd.f32 %v557_v62, %v453_v25 }
 0x768   :  { %v564_v0 = vsel %vm29_vm0, %v560_v63, 0.0 }
 0x769   :  { %565 = vadd.xlane.f32.xlu2 %v564_v0 }
 0x7d4   :  { %v563_v1 = vpop.xlane.xlu0 %562 }
 0x7d5   :  { %v567_v2 = vmul.f32 %v563_v1, %v1422_v10 }
 0x7d7   :  { %v569_v3 = vsub.f32 %v559_v59, %v567_v2 }
 0x7d9   :  { %v571_v4 = vmul.f32 %v569_v3, %v569_v3 }
 0x7db   :  { %v573_v5 = vsel %vm29_vm0, %v571_v4, 0.0 }
 0x7dc   :  { %v566_v40 = vpop.xlane.xlu2 %565  ;;  %574 = vadd.xlane.f32.xlu0 %v573_v5 }
 0x7dd   :  { %v568_v6 = vmul.f32 %v566_v40, %v1422_v10 }
 0x7df   :  { %v570_v7 = vsub.f32 %v560_v63, %v568_v6 }
 0x7e1   :  { %v572_v8 = vmul.f32 %v570_v7, %v570_v7 }
 0x7e3   :  { %v576_v9 = vsel %vm29_vm0, %v572_v8, 0.0 }
 0x7e4   :  { %577 = vadd.xlane.f32.xlu2 %v576_v9 }
 0x84f   :  { %v575_v12 = vpop.xlane.xlu0 %574 }
 0x850   :  { %v579_v13 = vmul.f32 %v575_v12, %v1422_v10 }
 0x852   :  { %v581_v16 = vadd.f32 1e-12, %v579_v13 }
 0x854   :  { %1350 = vrsqrt.f32 %v581_v16  ;;  %vm589_vm4 = vweird.f32 %v581_v16 }
 0x857   :  { %v578_v17 = vpop.xlane.xlu2 %577 }
 0x858   :  { %v580_v18 = vmul.f32 %v578_v17, %v1422_v10 }
 0x85a   :  { %v1351_v19 = vpop.eup %1350  ;;  %v582_v20 = vadd.f32 1e-12, %v580_v18 }
 0x85b   :  { %v584_v22 = vmul.f32 %v1351_v19, %v581_v16  ;;  %vm590_vm3 = vweird.f32 %v1351_v19 }
 0x85c   :  { %1352 = vrsqrt.f32 %v582_v20  ;;  %vm591_vm5 = vmor %vm589_vm4, %vm590_vm3  ;;  %vm599_vm7 = vweird.f32 %v582_v20 }
 0x85d   :  { %v585_v23 = vmul.f32 %v1351_v19, %v584_v22 }
 0x85f   :  { %v586_v24 = vmul.f32 0.5, %v585_v23 }
 0x861   :  { %v587_v25 = vsub.f32 1.5, %v586_v24 }
 0x862   :  { %v1353_v26 = vpop.eup %1352 }
 0x863   :  { %v588_v27 = vmul.f32 %v1351_v19, %v587_v25  ;;  %v594_v28 = vmul.f32 %v1353_v26, %v582_v20  ;;  %vm600_vm6 = vweird.f32 %v1353_v26 }
 0x864   :  { %vm601_vm11 = vmor %vm599_vm7, %vm600_vm6 }
 0x865   :  { %v595_v29 = vmul.f32 %v1353_v26, %v594_v28  ;;  %v592_v31 = vsel %vm591_vm5, %v1351_v19, %v588_v27 }
 0x866   :  { %v603_v35 = vmul.f32 %v592_v31, %v569_v3 }
 0x867   :  { %v596_v32 = vmul.f32 0.5, %v595_v29 }
 0x868   :  { %v606_v39 = vmul.f32 %v605_v34, %v603_v35 }
 0x869   :  { %v597_v33 = vsub.f32 1.5, %v596_v32 }
 0x86a   :  { %v1576_v43 = vadd.f32 %v608_v38, %v606_v39 }
 0x86b   :  { %v598_v36 = vmul.f32 %v1353_v26, %v597_v33 }
 0x86d   :  { %v602_v37 = vsel %vm601_vm11, %v1353_v26, %v598_v36 }
 0x86e   :  { %v604_v41 = vmul.f32 %v602_v37, %v570_v7 }
 0x870   :  { %v607_v42 = vmul.f32 %v605_v34, %v604_v41 }
 0x872   :  { %v1578_v44 = vadd.f32 %v608_v38, %v607_v42 }
 0x874   :  { %v611_v45 = vpack.c.bf16 %v1578_v44, %v1576_v43 }
 0x876   :  { %1228 = vmatmul.msk.bf16.vlgmr.msrb.gmra.mxu3 %vm29_vm0, %v611_v45 }
 0x8f9   :  { %v641_v47 = vpop.f32.mrf.mxu3 }
 0x8fa   :  { %v642_v48 = vadd.f32 %v641_v47, %v616_v46 }
 0x8fc   :  { %v646_v49 = vpack.c.bf16 %v642_v48, %v642_v48 }
 0x8fe   :  { %v649_v52 = vunpack.c.l.b16 %v646_v49 }
 0x900   :  { %v1584_v53 = vpack.c.b16 %v649_v52, %v649_v52 }
 0x901   :  { %v643_v54 = vpop.f32.mrf.mxu3 }
 0x902   :  { %v644_v50 = vadd.f32 %v643_v54, %v616_v46  ;;  %764 = vrot.lane.b32.xlu2 %v1584_v53, %s1383_s24  ;;  %651 = vrot.lane.b32.xlu0 %v1584_v53, %s1384_s25 }
 0x904   :  { %v647_v55 = vpack.c.bf16 %v644_v50, %v644_v50 }
 0x906   :  { %v673_v56 = vunpack.c.l.b16 %v647_v55 }
 0x908   :  { %v1590_v57 = vpack.c.b16 %v673_v56, %v673_v56 }
 0x90a   :  { %675 = vrot.lane.b32.xlu1 %v1590_v57, %s1384_s25  ;;  %787 = vrot.lane.b32.xlu0 %v1590_v57, %s1383_s24 }
 0x912   :  { %762 = vrot.lane.b32.xlu1 %v1584_v53, %s1385_s26  ;;  %785 = vrot.lane.b32.xlu0 %v1590_v57, %s1385_s26 }
 0x95c   :  { %v765_v51 = vpop.permute.xlu2 %764 }
 0x95d   :  { %v770_v60 = vsel %vm133_vm8, %v765_v51, 0 }
 0x974   :  { %v652_v58 = vpop.permute.xlu0 %651 }
 0x975   :  { %v657_v59 = vsel %vm133_vm8, %v652_v58, 0 }
 0x976   :  { %666 = vmatpush.bf16.xpose.msrb.mxu0 %v657_v59 }
 0x97c   :  { %v676_v61 = vpop.permute.xlu1 %675  ;;  %v788_v62 = vpop.permute.xlu0 %787 }
 0x97d   :  { %v681_v63 = vsel %vm133_vm8, %v676_v61, 0  ;;  %v793_v0 = vsel %vm133_vm8, %v788_v62, 0  ;;  %1229 = vmatmul.msk.bf16.vlgmr.msrb.gmra.mxu0 %vm133_vm8, %v646_v49 }
 0x97e   :  { %779 = vmatpush.bf16.xpose.msra.mxu0 %v770_v60  ;;  %690 = vmatpush.bf16.xpose.msrb.mxu1 %v681_v63 }
 0x984   :  { %v763_v1 = vpop.permute.xlu1 %762  ;;  %v786_v2 = vpop.permute.xlu0 %785 }
 0x985   :  { %1230 = vmatmul.msk.bf16.vlgmr.msrb.gmra.mxu1 %vm133_vm8, %v647_v55 }
 0x986   :  { %802 = vmatpush.bf16.xpose.msra.mxu1 %v793_v0 }
 0x98d   :  { %1233 = vmatmul.msk.bf16.vlgmr.msra.gmra.mxu0 %vm133_vm8, %v763_v1 }
 0x995   :  { %1234 = vmatmul.msk.bf16.vlgmr.msra.gmra.mxu1 %vm133_vm8, %v786_v2 }
 0x9fa   :  { %v668_v3 = vpop.f32.mrf.mxu0 }
 0x9fb   :  { %v669_v4 = vadd.f32 %v668_v3, %v1478_v15 }
 0x9fd   :  { %v696_v5 = vsel %vm177_vm9, %v669_v4, -inf }
 0x9fe   :  { %697 = vmax.xlane.f32.xlu2 %v696_v5  ;;  %v1294_v5 = vld [vmem:[%s1706_s2 + $0x68] sm:$0xff] }
 0x9ff   :  { %911 = vmatpush.bf16.msrb.mxu0 %v1294_v5 }
 0xa02   :  { %v670_v40 = vpop.f32.mrf.mxu0  ;;  %v692_v6 = vpop.f32.mrf.mxu1 }
 0xa03   :  { %v693_v7 = vadd.f32 %v692_v6, %v1482_v21 }
 0xa05   :  { %v699_v8 = vsel %vm177_vm9, %v693_v7, -inf }
 0xa06   :  { %700 = vmax.xlane.f32.xlu1 %v699_v8 }
 0xa0a   :  { %v694_v9 = vpop.f32.mrf.mxu1  ;;  %v781_v11 = vpop.f32.mrf.mxu0 }
 0xa0b   :  { %v782_v12 = vadd.f32 %v781_v11, %v1478_v15 }
 0xa0d   :  { %v808_v13 = vsel %vm177_vm9, %v782_v12, -inf }
 0xa0e   :  { %809 = vmax.xlane.f32.xlu0 %v808_v13  ;;  %v1293_v13 = vld [vmem:[%s1706_s2 + $0x60] sm:$0xff] }
 0xa0f   :  { %912 = vmatpush.bf16.msrb.mxu0 %v1293_v13 }
 0xa12   :  { %v783_v14 = vpop.f32.mrf.mxu0  ;;  %v804_v16 = vpop.f32.mrf.mxu1 }
 0xa13   :  { %v805_v17 = vadd.f32 %v804_v16, %v1482_v21 }
 0xa15   :  { %v811_v18 = vsel %vm177_vm9, %v805_v17, -inf }
 0xa16   :  { %812 = vmax.xlane.f32.xlu2 %v811_v18 }
 0xa1a   :  { %v806_v19 = vpop.f32.mrf.mxu1 }
 0xa2e   :  { %720 = vrot.lane.b32.xlu2 %v1584_v53, %s1386_s1 }
 0xa36   :  { %853 = vrot.lane.b32.xlu2 %v1590_v57, %s1387_s29 }
 0xa71   :  { %v698_v20 = vpop.xlane.xlu2 %697 }
 0xa72   :  { %v702_v22 = vsub.f32 %v669_v4, %v698_v20 }
 0xa74   :  { %v704_v15 = vmul.f32 1.442695, %v702_v22  ;;  %v889_v22 = vperm.slane %v1572_v30, 3 }
 0xa76   :  { %1354 = vpow2.f32 %v704_v15 }
 0xa79   :  { %v701_v23 = vpop.xlane.xlu1 %700 }
 0xa7a   :  { %v703_v24 = vsub.f32 %v693_v7, %v701_v23 }
 0xa7c   :  { %v1355_v25 = vpop.eup %1354  ;;  %v706_v26 = vmul.f32 1.442695, %v703_v24 }
 0xa7d   :  { %v708_v21 = vsel %vm177_vm9, %v1355_v25, 0.0 }
 0xa7e   :  { %1356 = vpow2.f32 %v706_v26  ;;  %709 = vadd.xlane.f32.xlu1 %v708_v21 }
 0xa81   :  { %v810_v27 = vpop.xlane.xlu0 %809 }
 0xa82   :  { %v814_v28 = vsub.f32 %v782_v12, %v810_v27 }
 0xa84   :  { %v1357_v29 = vpop.eup %1356  ;;  %v816_v31 = vmul.f32 1.442695, %v814_v28 }
 0xa85   :  { %v711_v32 = vsel %vm177_vm9, %v1357_v29, 0.0 }
 0xa86   :  { %1358 = vpow2.f32 %v816_v31  ;;  %712 = vadd.xlane.f32.xlu0 %v711_v32 }
 0xa89   :  { %v813_v33 = vpop.xlane.xlu2 %812 }
 0xa8a   :  { %v815_v34 = vsub.f32 %v805_v17, %v813_v33 }
 0xa8c   :  { %v1359_v35 = vpop.eup %1358  ;;  %v818_v36 = vmul.f32 1.442695, %v815_v34 }
 0xa8d   :  { %v820_v37 = vsel %vm177_vm9, %v1359_v35, 0.0 }
 0xa8e   :  { %1360 = vpow2.f32 %v818_v36  ;;  %821 = vadd.xlane.f32.xlu0 %v820_v37 }
 0xa91   :  { %v721_v38 = vpop.permute.xlu2 %720 }
 0xa92   :  { %v726_v39 = vsel %vm207_vm10, %v721_v38, 0 }
 0xa93   :  { %735 = vmatpush.bf16.msrb.mxu2 %v726_v39 }
 0xa94   :  { %v1361_v41 = vpop.eup %1360 }
 0xa95   :  { %v823_v42 = vsel %vm177_vm9, %v1361_v41, 0.0 }
 0xa96   :  { %824 = vadd.xlane.f32.xlu0 %v823_v42  ;;  %v1295_v42 = vld [vmem:[%s1706_s2 + $0x70] sm:$0xff] }
 0xa97   :  { %741 = vrot.lane.b32.xlu1 %v1590_v57, %s1386_s1 }
 0xa99   :  { %v854_v50 = vpop.permute.xlu2 %853 }
 0xa9a   :  { %v859_v57 = vsel %vm207_vm10, %v854_v50, 0 }
 0xaaa   :  { %832 = vrot.lane.b32.xlu0 %v1584_v53, %s1387_s29 }
 0xaf1   :  { %v710_v45 = vpop.xlane.xlu1 %709 }
 0xaf2   :  { %1362 = vrcp.f32 %v710_v45 }
 0xaf8   :  { %v1363_v46 = vpop.eup %1362 }
 0xaf9   :  { %v716_v47 = vmul.f32 %v1363_v46, %v1355_v25  ;;  %v713_v48 = vpop.xlane.xlu0 %712 }
 0xafa   :  { %1364 = vrcp.f32 %v713_v48 }
 0xafb   :  { %v718_v49 = vpack.c.bf16 %v716_v47, %v716_v47 }
 0xafd   :  { %1231 = vmatmul.msk.bf16.vlgmr.msrb.gmra.mxu2 %vm177_vm9, %v718_v49 }
 0xb00   :  { %v1365_v54 = vpop.eup %1364 }
 0xb01   :  { %v822_v52 = vpop.xlane.xlu0 %821  ;;  %v717_v55 = vmul.f32 %v1365_v54, %v1357_v29 }
 0xb03   :  { %v719_v53 = vpack.c.bf16 %v717_v55, %v717_v55 }
 0xb09   :  { %v742_v56 = vpop.permute.xlu1 %741  ;;  %v825_v58 = vpop.xlane.xlu0 %824 }
 0xb0a   :  { %v747_v51 = vsel %vm207_vm10, %v742_v56, 0  ;;  %1366 = vrcp.f32 %v825_v58 }
 0xb0b   :  { %756 = vmatpush.bf16.msra.mxu3 %v747_v51  ;;  %1368 = vrcp.f32 %v822_v52 }
 0xb0e   :  { %1232 = vmatmul.msk.bf16.vlgmr.msra.gmra.mxu3 %vm177_vm9, %v719_v53 }
 0xb0f   :  { %868 = vmatpush.bf16.msrb.mxu3 %v859_v57 }
 0xb10   :  { %v1367_v59 = vpop.eup %1366 }
 0xb11   :  { %v1369_v60 = vpop.eup %1368  ;;  %v829_v61 = vmul.f32 %v1367_v59, %v1361_v41 }
 0xb12   :  { %v828_v62 = vmul.f32 %v1369_v60, %v1359_v35 }
 0xb13   :  { %v831_v63 = vpack.c.bf16 %v829_v61, %v829_v61  ;;  %v965_v61 = vperm.slane %v1572_v30, 4 }
 0xb14   :  { %v830_v2 = vpack.c.bf16 %v828_v62, %v828_v62 }
 0xb1c   :  { %v833_v0 = vpop.permute.xlu0 %832 }
 0xb1d   :  { %v838_v1 = vsel %vm207_vm10, %v833_v0, 0 }
 0xb1e   :  { %847 = vmatpush.bf16.msra.mxu2 %v838_v1  ;;  %1236 = vmatmul.msk.bf16.vlgmr.msrb.gmra.mxu3 %vm177_vm9, %v831_v63  ;;  %v968_v1 = vperm.slane %v1572_v30, 5 }
 0xb21   :  { %1235 = vmatmul.msk.bf16.vlgmr.msra.gmra.mxu2 %vm177_vm9, %v830_v2 }
 0xb80   :  { %v737_v3 = vpop.f32.mrf.mxu2 }
 0xb88   :  { %v739_v4 = vpop.f32.mrf.mxu2 }
 0xb91   :  { %v758_v40 = vpop.f32.mrf.mxu3 }
 0xb99   :  { %v760_v6 = vpop.f32.mrf.mxu3 }
 0xba1   :  { %v870_v7 = vpop.f32.mrf.mxu3 }
 0xba4   :  { %v849_v8 = vpop.f32.mrf.mxu2 }
 0xba5   :  { %v1315_v9 = vpack.i.bf16 %v870_v7, %v849_v8  ;;  %v1300_v7 = vld [vmem:[%s1706_s2 + $0x98] sm:$0xff]  ;;  %v1299_v8 = vld [vmem:[%s1706_s2 + $0x90] sm:$0xff] }
 0xba6   :  { %1065 = vmatpush.bf16.msrb.mxu2 %v1300_v7 }
 0xba7   :  { %1316 = vrot.lane.b32.xlu1 %v1315_v9, %s1388_s6  ;;  %v1298_v9 = vld [vmem:[%s1706_s2 + $0x88] sm:$0xff] }
 0xba9   :  { %v872_v11 = vpop.f32.mrf.mxu3 }
 0xbaa   :  { %1066 = vmatpush.bf16.msrb.mxu2 %v1299_v8  ;;  %v976_v11 = vperm.slane %v1572_v30, 6  ;;  %v20_v8 = vld [vmem:[%s1707_s3 + $0x10] sm:$0xff] }
 0xbac   :  { %v851_v12 = vpop.f32.mrf.mxu2 }
 0xbad   :  { %v1297_v12 = vld [vmem:[%s1706_s2 + $0x80] sm:$0xff] }
 0xbae   :  { %1067 = vmatpush.bf16.msrb.mxu2 %v1298_v9 }
 0xbb2   :  { %1068 = vmatpush.bf16.msrb.mxu2 %v1297_v12  ;;  %v1121_v12 = vperm.slane %v20_v8, 0 }
 0xc19   :  { %v1317_v14 = vpop.permute.xlu1 %1316 }
 0xc1a   :  { %v1319_v16 = vunpack.i.h.bf16 %v1317_v14  ;;  %v1318_v17 = vunpack.i.l.bf16 %v1317_v14 }
 0xc1c   :  { %v883_v18 = vsel %vm133_vm8, %v758_v40, %v1319_v16  ;;  %v882_v19 = vsel %vm133_vm8, %v737_v3, %v1318_v17 }
 0xc1d   :  { %v884_v20 = vpack.c.bf16 %v883_v18, %v882_v19 }
 0xc1f   :  { %1245 = vmatmul.msk.bf16.vlgmr.msrb.gmra.mxu0 %vm29_vm0, %v884_v20 }
 0xc9c   :  { %v914_v15 = vpop.f32.mrf.mxu0 }
 0xc9d   :  { %v915_v23 = vadd.f32 %v914_v15, %v889_v22 }
 0xc9f   :  { %v919_v24 = vadd.f32 %v915_v23, %v1576_v43 }
 0xca1   :  { %v921_v25 = vsel %vm29_vm0, %v919_v24, 0.0 }
 0xca2   :  { %922 = vadd.xlane.f32.xlu2 %v921_v25 }
 0xca4   :  { %v916_v26 = vpop.f32.mrf.mxu0 }
 0xca5   :  { %v917_v21 = vadd.f32 %v916_v26, %v889_v22 }
 0xca7   :  { %v920_v27 = vadd.f32 %v917_v21, %v1578_v44  ;;  %v1296_v44 = vld [vmem:[%s1706_s2 + $0x78] sm:$0xff] }
 0xca8   :  { %998 = vmatpush.bf16.msrb.mxu1 %v1296_v44 }
 0xca9   :  { %v924_v28 = vsel %vm29_vm0, %v920_v27, 0.0 }
 0xcaa   :  { %925 = vadd.xlane.f32.xlu1 %v924_v28 }
 0xcac   :  { %999 = vmatpush.bf16.msrb.mxu1 %v1295_v42 }
 0xd15   :  { %v923_v29 = vpop.xlane.xlu2 %922 }
 0xd16   :  { %v927_v31 = vmul.f32 %v923_v29, %v1422_v10 }
 0xd18   :  { %v929_v32 = vsub.f32 %v919_v24, %v927_v31 }
 0xd1a   :  { %v931_v33 = vmul.f32 %v929_v32, %v929_v32 }
 0xd1c   :  { %v933_v34 = vsel %vm29_vm0, %v931_v33, 0.0 }
 0xd1d   :  { %v926_v35 = vpop.xlane.xlu1 %925  ;;  %934 = vadd.xlane.f32.xlu0 %v933_v34 }
 0xd1e   :  { %v928_v43 = vmul.f32 %v926_v35, %v1422_v10 }
 0xd20   :  { %v930_v36 = vsub.f32 %v920_v27, %v928_v43 }
 0xd22   :  { %v932_v37 = vmul.f32 %v930_v36, %v930_v36 }
 0xd24   :  { %v936_v38 = vsel %vm29_vm0, %v932_v37, 0.0 }
 0xd25   :  { %937 = vadd.xlane.f32.xlu2 %v936_v38 }
 0xd90   :  { %v935_v39 = vpop.xlane.xlu0 %934 }
 0xd91   :  { %v939_v41 = vmul.f32 %v935_v39, %v1422_v10 }
 0xd93   :  { %v941_v45 = vadd.f32 1e-12, %v939_v41 }
 0xd95   :  { %1370 = vrsqrt.f32 %v941_v45  ;;  %vm949_vm9 = vweird.f32 %v941_v45 }
 0xd98   :  { %v938_v46 = vpop.xlane.xlu2 %937 }
 0xd99   :  { %v940_v47 = vmul.f32 %v938_v46, %v1422_v10 }
 0xd9b   :  { %v1371_v48 = vpop.eup %1370  ;;  %v942_v49 = vadd.f32 1e-12, %v940_v47 }
 0xd9c   :  { %v944_v52 = vmul.f32 %v1371_v48, %v941_v45  ;;  %vm950_vm8 = vweird.f32 %v1371_v48 }
 0xd9d   :  { %1372 = vrsqrt.f32 %v942_v49  ;;  %vm951_vm10 = vmor %vm949_vm9, %vm950_vm8  ;;  %vm959_vm13 = vweird.f32 %v942_v49 }
 0xd9e   :  { %v945_v54 = vmul.f32 %v1371_v48, %v944_v52 }
 0xda0   :  { %v946_v50 = vmul.f32 0.5, %v945_v54 }
 0xda2   :  { %v947_v55 = vsub.f32 1.5, %v946_v50 }
 0xda3   :  { %v1373_v56 = vpop.eup %1372 }
 0xda4   :  { %v948_v51 = vmul.f32 %v1371_v48, %v947_v55  ;;  %v954_v57 = vmul.f32 %v1373_v56, %v942_v49  ;;  %vm960_vm12 = vweird.f32 %v1373_v56 }
 0xda5   :  { %vm961_vm14 = vmor %vm959_vm13, %vm960_vm12 }
 0xda6   :  { %v955_v53 = vmul.f32 %v1373_v56, %v954_v57  ;;  %v952_v58 = vsel %vm951_vm10, %v1371_v48, %v948_v51  ;;  %v1302_v57 = vld [vmem:[%s1706_s2 + $0xa8] sm:$0xff] }
 0xda7   :  { %v963_v62 = vmul.f32 %v952_v58, %v929_v32  ;;  %1154 = vmatpush.bf16.msra.mxu3 %v1302_v57 }
 0xda8   :  { %v956_v59 = vmul.f32 0.5, %v955_v53 }
 0xda9   :  { %v966_v2 = vmul.f32 %v965_v61, %v963_v62 }
 0xdaa   :  { %v957_v60 = vsub.f32 1.5, %v956_v59  ;;  %v1301_v59 = vld [vmem:[%s1706_s2 + $0xa0] sm:$0xff] }
 0xdab   :  { %v969_v5 = vadd.f32 %v968_v1, %v966_v2  ;;  %1155 = vmatpush.bf16.msra.mxu3 %v1301_v59 }
 0xdac   :  { %v958_v63 = vmul.f32 %v1373_v56, %v957_v60 }
 0xdae   :  { %v962_v0 = vsel %vm961_vm14, %v1373_v56, %v958_v63 }
 0xdaf   :  { %v964_v3 = vmul.f32 %v962_v0, %v930_v36  ;;  %v1033_v36 = vperm.slane %v1572_v30, 7 }
 0xdb1   :  { %v967_v4 = vmul.f32 %v965_v61, %v964_v3 }
 0xdb3   :  { %v970_v40 = vadd.f32 %v968_v1, %v967_v4 }
 0xdb5   :  { %v971_v6 = vpack.c.bf16 %v970_v40, %v969_v5 }
 0xdb7   :  { %1254 = vmatmul.msk.bf16.vlgmr.msrb.gmra.mxu1 %vm29_vm0, %v971_v6 }
 0xe34   :  { %v1001_v13 = vpop.f32.mrf.mxu1 }
 0xe35   :  { %v1002_v14 = vadd.f32 %v1001_v13, %v976_v11 }
 0xe37   :  { %v1006_v16 = vmul.f32 %v1002_v14, %v1002_v14 }
 0xe39   :  { %v1008_v17 = vmul.f32 %v1006_v16, %v1002_v14 }
 0xe3b   :  { %v1010_v18 = vmul.f32 0.044715, %v1008_v17  ;;  %v1124_v17 = vperm.slane %v20_v8, 1 }
 0xe3c   :  { %v1003_v19 = vpop.f32.mrf.mxu1 }
 0xe3d   :  { %v1012_v20 = vadd.f32 %v1010_v18, %v1002_v14  ;;  %v1004_v22 = vadd.f32 %v1003_v19, %v976_v11 }
 0xe3f   :  { %v1014_v15 = vmul.f32 0.7978846, %v1012_v20  ;;  %v1007_v23 = vmul.f32 %v1004_v22, %v1004_v22 }
 0xe41   :  { %v1009_v24 = vmul.f32 %v1007_v23, %v1004_v22  ;;  %1374 = vtanh.f32 %v1014_v15 }
 0xe43   :  { %v1011_v25 = vmul.f32 0.044715, %v1009_v24  ;;  %v1132_v24 = vperm.slane %v20_v8, 2 }
 0xe45   :  { %v1013_v26 = vadd.f32 %v1011_v25, %v1004_v22 }
 0xe47   :  { %v1015_v21 = vmul.f32 0.7978846, %v1013_v26  ;;  %v1375_v27 = vpop.eup %1374 }
 0xe48   :  { %v1018_v28 = vadd.f32 1.0, %v1375_v27 }
 0xe49   :  { %1376 = vtanh.f32 %v1015_v21 }
 0xe4a   :  { %v1020_v31 = vmul.f32 0.5, %v1018_v28 }
 0xe4c   :  { %v1022_v34 = vmul.f32 %v1020_v31, %v1002_v14 }
 0xe4f   :  { %v1377_v29 = vpop.eup %1376 }
 0xe50   :  { %v1019_v32 = vadd.f32 1.0, %v1377_v29 }
 0xe52   :  { %v1021_v33 = vmul.f32 0.5, %v1019_v32 }
 0xe54   :  { %v1023_v35 = vmul.f32 %v1021_v33, %v1004_v22 }
 0xe56   :  { %v1024_v43 = vpack.c.bf16 %v1023_v35, %v1022_v34 }
 0xe58   :  { %1271 = vmatmul.msk.bf16.vlgmr.msrb.gmra.mxu2 %vm541_vm2, %v1024_v43 }
 0xedb   :  { %v1070_v37 = vpop.f32.mrf.mxu2 }
 0xedc   :  { %v1071_v38 = vadd.f32 %v1070_v37, %v1033_v36 }
 0xede   :  { %v1075_v44 = vadd.f32 %v1071_v38, %v969_v5 }
 0xee0   :  { %v1077_v39 = vsel %vm29_vm0, %v1075_v44, 0.0 }
 0xee1   :  { %1078 = vadd.xlane.f32.xlu1 %v1077_v39 }
 0xee3   :  { %v1072_v41 = vpop.f32.mrf.mxu2 }
 0xee4   :  { %v1073_v42 = vadd.f32 %v1072_v41, %v1033_v36 }
 0xee6   :  { %v1076_v45 = vadd.f32 %v1073_v42, %v970_v40 }
 0xee8   :  { %v1080_v46 = vsel %vm29_vm0, %v1076_v45, 0.0 }
 0xee9   :  { %1081 = vadd.xlane.f32.xlu2 %v1080_v46 }
 0xf54   :  { %v1079_v47 = vpop.xlane.xlu1 %1078 }
 0xf55   :  { %v1083_v48 = vmul.f32 %v1079_v47, %v1422_v10 }
 0xf57   :  { %v1085_v49 = vsub.f32 %v1075_v44, %v1083_v48 }
 0xf59   :  { %v1087_v52 = vmul.f32 %v1085_v49, %v1085_v49 }
 0xf5b   :  { %v1089_v54 = vsel %vm29_vm0, %v1087_v52, 0.0 }
 0xf5c   :  { %v1082_v30 = vpop.xlane.xlu2 %1081  ;;  %1090 = vadd.xlane.f32.xlu0 %v1089_v54 }
 0xf5d   :  { %v1084_v50 = vmul.f32 %v1082_v30, %v1422_v10 }
 0xf5f   :  { %v1086_v55 = vsub.f32 %v1076_v45, %v1084_v50 }
 0xf61   :  { %v1088_v56 = vmul.f32 %v1086_v55, %v1086_v55 }
 0xf63   :  { %v1092_v51 = vsel %vm29_vm0, %v1088_v56, 0.0 }
 0xf64   :  { %1093 = vadd.xlane.f32.xlu1 %v1092_v51 }
 0xfcf   :  { %v1091_v53 = vpop.xlane.xlu0 %1090 }
 0xfd0   :  { %v1095_v58 = vmul.f32 %v1091_v53, %v1422_v10 }
 0xfd2   :  { %v1097_v60 = vadd.f32 1e-12, %v1095_v58 }
 0xfd4   :  { %1378 = vrsqrt.f32 %v1097_v60  ;;  %vm1105_vm1 = vweird.f32 %v1097_v60 }
 0xfd7   :  { %v1094_v61 = vpop.xlane.xlu1 %1093 }
 0xfd8   :  { %v1096_v62 = vmul.f32 %v1094_v61, %v1422_v10 }
 0xfda   :  { %v1379_v63 = vpop.eup %1378  ;;  %v1098_v0 = vadd.f32 1e-12, %v1096_v62 }
 0xfdb   :  { %v1100_v1 = vmul.f32 %v1379_v63, %v1097_v60  ;;  %vm1106_vm15 = vweird.f32 %v1379_v63 }
 0xfdc   :  { %1380 = vrsqrt.f32 %v1098_v0  ;;  %vm1107_vm2 = vmor %vm1105_vm1, %vm1106_vm15  ;;  %vm1115_vm4 = vweird.f32 %v1098_v0 }
 0xfdd   :  { %v1101_v2 = vmul.f32 %v1379_v63, %v1100_v1 }
 0xfdf   :  { %v1102_v3 = vmul.f32 0.5, %v1101_v2 }
 0xfe1   :  { %v1103_v4 = vsub.f32 1.5, %v1102_v3 }
 0xfe2   :  { %v1381_v5 = vpop.eup %1380 }
 0xfe3   :  { %v1104_v40 = vmul.f32 %v1379_v63, %v1103_v4  ;;  %v1110_v6 = vmul.f32 %v1381_v5, %v1098_v0  ;;  %vm1116_vm3 = vweird.f32 %v1381_v5 }
 0xfe4   :  { %vm1117_vm5 = vmor %vm1115_vm4, %vm1116_vm3 }
 0xfe5   :  { %v1111_v7 = vmul.f32 %v1381_v5, %v1110_v6  ;;  %v1108_v9 = vsel %vm1107_vm2, %v1379_v63, %v1104_v40 }
 0xfe6   :  { %v1119_v13 = vmul.f32 %v1108_v9, %v1085_v49 }
 0xfe7   :  { %v1112_v10 = vmul.f32 0.5, %v1111_v7 }
 0xfe8   :  { %v1122_v18 = vmul.f32 %v1121_v12, %v1119_v13 }
 0xfe9   :  { %v1113_v11 = vsub.f32 1.5, %v1112_v10 }
 0xfea   :  { %v1125_v22 = vadd.f32 %v1124_v17, %v1122_v18 }
 0xfeb   :  { %v1114_v14 = vmul.f32 %v1381_v5, %v1113_v11 }
 0xfed   :  { %v1118_v16 = vsel %vm1117_vm5, %v1381_v5, %v1114_v14 }
 0xfee   :  { %v1120_v19 = vmul.f32 %v1118_v16, %v1086_v55 }
 0xff0   :  { %v1123_v20 = vmul.f32 %v1121_v12, %v1120_v19 }
 0xff2   :  { %v1126_v15 = vadd.f32 %v1124_v17, %v1123_v20 }
 0xff4   :  { %v1127_v23 = vpack.c.bf16 %v1126_v15, %v1125_v22 }
 0xff6   :  { %1280 = vmatmul.msk.bf16.vlgmr.msra.gmra.mxu3 %vm29_vm0, %v1127_v23 }
0x1079   :  { %v1157_v25 = vpop.f32.mrf.mxu3 }
0x107a   :  { %v1158_v26 = vadd.f32 %v1157_v25, %v1132_v24 }
0x107c   :  { %1162 = vst [vmem:[%s1709_s4] sm:$0xff] %v1158_v26 }
0x1081   :  { %v1159_v21 = vpop.f32.mrf.mxu3 }
0x1082   :  { %v1160_v27 = vadd.f32 %v1159_v21, %v1132_v24 }
0x1084   :  { %1163 = vst [vmem:[%s1709_s4 + $0x8] sm:$0xff] %v1160_v27 }

</bundles_post_ra>
